<compile_context>
chip_gen: v6e
topology: v6e:2x2x1
jax: 0.10.0
libtpu: 0.0.40
codegen_flags: <defaults>
</compile_context>

<pallas_src>
import functools

import jax
import jax.numpy as jnp
from jax import lax
from jax.experimental import pallas as pl
from jax.experimental.pallas import tpu as pltpu


# ----------------------------- Pallas kernel -------------------------------


def _dae_kernel(seed_ref,                        # scalar-prefetch (SMEM)
                x_ref, we_ref, be_ref,           # input tile + encoder params
                w1_ref, b1_ref, w2_ref, b2_ref,  # fc middle-layer params
                wd_ref, bd_ref,                  # decoder params
                o_ref,                           # output tile
                *, dropout_p: float):
    x = x_ref[...]                               # native dtype (bf16 or f32)
    tb, row_len = x.shape

    # ---- nn.Dropout(p) (training mode; the 1/(1-p) scale is pre-folded into
    #      the encoder weight, so dropout here is just a keep/zero select) ----
    if dropout_p > 0.0:
        # Counter-based hash PRNG keyed on (seed, global element index).
        # Distinct per batch tile because the global row index includes
        # pl.program_id(0) * tile_rows.
        # NOTE: gidx is int32; wraps only if B*L > 2^31 (not these sizes).
        row = lax.broadcasted_iota(jnp.int32, x.shape, 0)
        col = lax.broadcasted_iota(jnp.int32, x.shape, 1)
        gidx = (pl.program_id(0) * tb + row) * row_len + col
        h = gidx.astype(jnp.uint32)
        h = h ^ (seed_ref[0].astype(jnp.uint32) * jnp.uint32(0x9E3779B1))
        h = h ^ (h >> jnp.uint32(16))
        h = h * jnp.uint32(0x7FEB352D)
        h = h ^ (h >> jnp.uint32(15))
        h = h * jnp.uint32(0x846CA68B)
        h = h ^ (h >> jnp.uint32(16))
        # 24-bit uniform integer, signed int32 threshold compare (no f32
        # conversion / multiply on the VPU).
        r = (h >> jnp.uint32(8)).astype(jnp.int32)
        thresh = jnp.int32(min(int(round(dropout_p * float(1 << 24))),
                               (1 << 24) - 1))
        x = jnp.where(r >= thresh, x, jnp.zeros_like(x))

    # ---- encoder: Linear(L -> latent) + ReLU  (weight carries dropout scale) ----
    h1 = jnp.dot(x.astype(jnp.bfloat16), we_ref[...],
                 preferred_element_type=jnp.float32) + be_ref[...]
    h1 = jnp.maximum(h1, 0.0)

    # ---- fc middle layer: Linear(latent -> fc)+ReLU ; Linear(fc -> latent)+ReLU ----
    f = jnp.dot(h1.astype(jnp.bfloat16), w1_ref[...],
                preferred_element_type=jnp.float32) + b1_ref[...]
    f = jnp.maximum(f, 0.0)
    g = jnp.dot(f.astype(jnp.bfloat16), w2_ref[...],
                preferred_element_type=jnp.float32) + b2_ref[...]
    g = jnp.maximum(g, 0.0)

    # ---- decoder: Linear(latent -> L) (reconstruction, no activation) ----
    o_ref[...] = (jnp.dot(g.astype(jnp.bfloat16), wd_ref[...],
                          preferred_element_type=jnp.float32)
                  + bd_ref[...]).astype(o_ref.dtype)


# ------------------------------ tile picker ---------------------------------


def _choose_tile_b(B: int) -> int:
    # Prefer big tiles (mem-bound sweet spot: >=512 rows reaches ~85% of HBM
    # roofline vs ~29% at 128), but keep >=2 grid steps so the "parallel"
    # grid axis can shard across both v7x TensorCores, and prefer tiles that
    # divide B so the wrapper never has to pad/copy x.
    for t in (1024, 512, 256, 128):
        if B % t == 0 and B // t >= 2:
            return t
    if B <= 1024:
        return B            # single whole-batch tile, no padding
    return 512              # large awkward batch: 512-row tiles, pad tail only


# ------------------------------- wrapper ------------------------------------


@functools.partial(jax.jit, static_argnames=("dropout_p", "tile_b", "out_dtype"))
def denoising_autoencoder_forward(x_nchw, params, seed, *,
                                  dropout_p: float = 0.0,
                                  tile_b=None,
                                  out_dtype=None):
    """x_nchw: (B, 1, L, 1), NCHW as in PyTorch. params from prepare_params()."""
    B, C, L, W = x_nchw.shape
    assert C == 1 and W == 1, "expected (B, 1, L, 1) input"
    x2d = x_nchw.reshape(B, L)                       # no dtype cast: bf16 in -> bf16 read
    odt = x_nchw.dtype if out_dtype is None else out_dtype

    we_b, be, w1_b, b1, w2_b, b2, wd_b, bd = params
    latent = we_b.shape[1]
    fc = w1_b.shape[1]

    tb = _choose_tile_b(B) if tile_b is None else int(tile_b)
    b_pad = pl.cdiv(B, tb) * tb
    if b_pad != B:
        # Only hit for awkward B; padded rows are row-independent through the
        # matmul chain and get sliced off below.
        x2d = jnp.pad(x2d, ((0, b_pad - B), (0, 0)))

    seed_arr = jnp.asarray(seed, dtype=jnp.int32).reshape((1,))

    def pinned(shape):
        # constant block index -> DMA'd once, VMEM-resident across batch tiles;
        # Buffered(1): no point double-buffering a block that never changes.
        return pl.BlockSpec(shape, lambda i, s: (0,) * len(shape),
                            pipeline_mode=pl.Buffered(1))

    out2d = pl.pallas_call(
        functools.partial(_dae_kernel, dropout_p=float(dropout_p)),
        out_shape=jax.ShapeDtypeStruct((b_pad, L), odt),
        grid_spec=pltpu.PrefetchScalarGridSpec(
            num_scalar_prefetch=1,
            grid=(b_pad // tb,),
            in_specs=[
                pl.BlockSpec((tb, L), lambda i, s: (i, 0)),   # x tile
                pinned((L, latent)),     # encoder weight (bf16, dropout scale folded in)
                pinned((1, latent)),     # encoder bias
                pinned((latent, fc)),    # fc1 weight
                pinned((1, fc)),         # fc1 bias
                pinned((fc, latent)),    # fc2 weight
                pinned((1, latent)),     # fc2 bias
                pinned((latent, L)),     # decoder weight
                pinned((1, L)),          # decoder bias
            ],
            out_specs=pl.BlockSpec((tb, L), lambda i, s: (i, 0)),
        ),
        compiler_params=pltpu.CompilerParams(
            dimension_semantics=("parallel",)),   # shards tiles across v7x TCs
    )(seed_arr, x2d, we_b, be, w1_b, b1, w2_b, b2, wd_b, bd)

    return out2d[:B].reshape(B, 1, L, 1)


# ------------------------- parameter preparation ----------------------------


def prepare_params(raw_params, dropout_p: float):
    """One-time prep: fold dropout 1/(1-p) scale into encoder weight and cast
    all matmul weights to bf16 for the MXU (biases stay f32)."""
    we, be, w1, b1, w2, b2, wd, bd = raw_params
    scale = 1.0 / (1.0 - dropout_p) if dropout_p > 0.0 else 1.0
    return ((we * jnp.float32(scale)).astype(jnp.bfloat16), be.astype(jnp.float32),
            w1.astype(jnp.bfloat16), b1.astype(jnp.float32),
            w2.astype(jnp.bfloat16), b2.astype(jnp.float32),
            wd.astype(jnp.bfloat16), bd.astype(jnp.float32))


def init_params(key, L, latent, fc):
    ks = jax.random.split(key, 8)

    def lin(kw, kb, fan_in, fan_out):
        bound = 1.0 / jnp.sqrt(fan_in)
        w = jax.random.uniform(kw, (fan_in, fan_out), jnp.float32, -bound, bound)
        b = jax.random.uniform(kb, (1, fan_out), jnp.float32, -bound, bound)
        return w, b

    we, be = lin(ks[0], ks[1], L, latent)        # encoder
    w1, b1 = lin(ks[2], ks[3], latent, fc)       # fc layer 1
    w2, b2 = lin(ks[4], ks[5], fc, latent)       # fc layer 2
    wd, bd = lin(ks[6], ks[7], latent, L)        # decoder
    return (we, be, w1, b1, w2, b2, wd, bd)


if __name__ == "__main__":
    # FC=256 so fc contractions fill the 256-wide v6e/v7x MXU; all matmul
    # operands stay lane-dense (multiples of 128). B=256 -> tile picker uses
    # tb=128 (2 grid steps, keeps both v7x TensorCores busy, no padding).
    B, L, LATENT, FC = 256, 256, 128, 256
    DROPOUT_P = 0.1

    key = jax.random.PRNGKey(0)
    kx, kp = jax.random.split(key)
    # bf16 input -> bf16 output: halves the dominant HBM traffic of this
    # memory-bound kernel (matmuls were bf16 on the MXU anyway).
    x = jax.random.normal(kx, (B, 1, L, 1), dtype=jnp.float32).astype(jnp.bfloat16)
    params = prepare_params(init_params(kp, L, LATENT, FC), DROPOUT_P)

    out = denoising_autoencoder_forward(x, params, jnp.int32(1234),
                                        dropout_p=DROPOUT_P)
    out = jax.block_until_ready(out)
    assert out.shape == (B, 1, L, 1), out.shape
    assert bool(jnp.all(jnp.isfinite(out.astype(jnp.float32))))
    print("KERNEL_OK")
</pallas_src>

<mosaic_0001>
module attributes {stable_mosaic.version = 11 : i64} {
  func.func @_dae_kernel(%arg0: i32, %arg1: memref<1xi32, #tpu.memory_space<smem>>, %arg2: memref<128x256xbf16, #tpu.memory_space<vmem>>, %arg3: memref<256x128xbf16, #tpu.memory_space<vmem>>, %arg4: memref<1x128xf32, #tpu.memory_space<vmem>>, %arg5: memref<128x256xbf16, #tpu.memory_space<vmem>>, %arg6: memref<1x256xf32, #tpu.memory_space<vmem>>, %arg7: memref<256x128xbf16, #tpu.memory_space<vmem>>, %arg8: memref<1x128xf32, #tpu.memory_space<vmem>>, %arg9: memref<128x256xbf16, #tpu.memory_space<vmem>>, %arg10: memref<1x256xf32, #tpu.memory_space<vmem>>, %arg11: memref<128x256xbf16, #tpu.memory_space<vmem>>) attributes {dimension_semantics = [#tpu.dimension_semantics<parallel>], iteration_bounds = array<i64: 2>, scalar_prefetch = 1 : i64, scratch_operands = 0 : i64, tpu.core_type = #tpu.core_type<tc>, window_params = [{transform_indices = @transform_0, window_bounds = array<i64: 128, 256>}, {pipeline_mode = #tpu.pipeline_mode<synchronous>, transform_indices = @transform_1, window_bounds = array<i64: 256, 128>}, {pipeline_mode = #tpu.pipeline_mode<synchronous>, transform_indices = @transform_2, window_bounds = array<i64: 1, 128>}, {pipeline_mode = #tpu.pipeline_mode<synchronous>, transform_indices = @transform_3, window_bounds = array<i64: 128, 256>}, {pipeline_mode = #tpu.pipeline_mode<synchronous>, transform_indices = @transform_4, window_bounds = array<i64: 1, 256>}, {pipeline_mode = #tpu.pipeline_mode<synchronous>, transform_indices = @transform_5, window_bounds = array<i64: 256, 128>}, {pipeline_mode = #tpu.pipeline_mode<synchronous>, transform_indices = @transform_6, window_bounds = array<i64: 1, 128>}, {pipeline_mode = #tpu.pipeline_mode<synchronous>, transform_indices = @transform_7, window_bounds = array<i64: 128, 256>}, {pipeline_mode = #tpu.pipeline_mode<synchronous>, transform_indices = @transform_8, window_bounds = array<i64: 1, 256>}, {transform_indices = @transform_9, window_bounds = array<i64: 128, 256>}]} {
    %c0 = arith.constant 0 : index
    %c0_0 = arith.constant 0 : index
    %0 = vector.load %arg2[%c0, %c0_0] : memref<128x256xbf16, #tpu.memory_space<vmem>>, vector<128x256xbf16>
    %1 = tpu.iota {dimensions = array<i32: 0>} : vector<128x256xi32>
    %2 = tpu.iota {dimensions = array<i32: 1>} : vector<128x256xi32>
    %c128_i32 = arith.constant 128 : i32
    %3 = arith.muli %arg0, %c128_i32 : i32
    %4 = vector.broadcast %3 : i32 to vector<128x256xi32>
    %5 = arith.addi %4, %1 : vector<128x256xi32>
    %c256_i32 = arith.constant 256 : i32
    %6 = vector.broadcast %c256_i32 : i32 to vector<128x256xi32>
    %7 = arith.muli %5, %6 : vector<128x256xi32>
    %8 = arith.addi %7, %2 : vector<128x256xi32>
    %c0_1 = arith.constant 0 : index
    %9 = memref.load %arg1[%c0_1] : memref<1xi32, #tpu.memory_space<smem>>
    %c-1640531535_i32 = arith.constant -1640531535 : i32
    %10 = arith.muli %9, %c-1640531535_i32 : i32
    %11 = vector.broadcast %10 : i32 to vector<128x256xi32>
    %12 = arith.xori %8, %11 : vector<128x256xi32>
    %c16_i32 = arith.constant 16 : i32
    %13 = vector.broadcast %c16_i32 : i32 to vector<128x256xi32>
    %14 = arith.shrui %12, %13 : vector<128x256xi32>
    %15 = arith.xori %12, %14 : vector<128x256xi32>
    %c2146121005_i32 = arith.constant 2146121005 : i32
    %16 = vector.broadcast %c2146121005_i32 : i32 to vector<128x256xi32>
    %17 = arith.muli %15, %16 : vector<128x256xi32>
    %c15_i32 = arith.constant 15 : i32
    %18 = vector.broadcast %c15_i32 : i32 to vector<128x256xi32>
    %19 = arith.shrui %17, %18 : vector<128x256xi32>
    %20 = arith.xori %17, %19 : vector<128x256xi32>
    %c-2073254261_i32 = arith.constant -2073254261 : i32
    %21 = vector.broadcast %c-2073254261_i32 : i32 to vector<128x256xi32>
    %22 = arith.muli %20, %21 : vector<128x256xi32>
    %c16_i32_2 = arith.constant 16 : i32
    %23 = vector.broadcast %c16_i32_2 : i32 to vector<128x256xi32>
    %24 = arith.shrui %22, %23 : vector<128x256xi32>
    %25 = arith.xori %22, %24 : vector<128x256xi32>
    %c8_i32 = arith.constant 8 : i32
    %26 = vector.broadcast %c8_i32 : i32 to vector<128x256xi32>
    %27 = arith.shrui %25, %26 : vector<128x256xi32>
    %c1677722_i32 = arith.constant 1677722 : i32
    %28 = vector.broadcast %c1677722_i32 : i32 to vector<128x256xi32>
    %29 = arith.cmpi sge, %27, %28 : vector<128x256xi32>
    %cst = arith.constant 0.000000e+00 : bf16
    %30 = vector.broadcast %cst : bf16 to vector<128x256xbf16>
    %31 = arith.select %29, %0, %30 : vector<128x256xi1>, vector<128x256xbf16>
    %c0_3 = arith.constant 0 : index
    %c0_4 = arith.constant 0 : index
    %32 = vector.load %arg3[%c0_3, %c0_4] : memref<256x128xbf16, #tpu.memory_space<vmem>>, vector<256x128xbf16>
    %cst_5 = arith.constant dense<0.000000e+00> : vector<128x128xf32>
    %33 = tpu.matmul %31, %32, %cst_5 {dimension_numbers = #tpu.dot_dimension_numbers<[1], [0], [0], [1], [0, 0, 1, 1], [], []>} : vector<128x256xbf16>, vector<256x128xbf16>, vector<128x128xf32> -> vector<128x128xf32>
    %c0_6 = arith.constant 0 : index
    %c0_7 = arith.constant 0 : index
    %34 = vector.load %arg4[%c0_6, %c0_7] : memref<1x128xf32, #tpu.memory_space<vmem>>, vector<1x128xf32>
    %35 = vector.broadcast %34 : vector<1x128xf32> to vector<128x128xf32>
    %36 = arith.addf %33, %35 : vector<128x128xf32>
    %cst_8 = arith.constant 0.000000e+00 : f32
    %37 = vector.broadcast %cst_8 : f32 to vector<128x128xf32>
    %38 = arith.maximumf %36, %37 : vector<128x128xf32>
    %39 = arith.truncf %38 : vector<128x128xf32> to vector<128x128xbf16>
    %c0_9 = arith.constant 0 : index
    %c0_10 = arith.constant 0 : index
    %40 = vector.load %arg5[%c0_9, %c0_10] : memref<128x256xbf16, #tpu.memory_space<vmem>>, vector<128x256xbf16>
    %cst_11 = arith.constant dense<0.000000e+00> : vector<128x256xf32>
    %41 = tpu.matmul %39, %40, %cst_11 {dimension_numbers = #tpu.dot_dimension_numbers<[1], [0], [0], [1], [0, 0, 1, 1], [], []>} : vector<128x128xbf16>, vector<128x256xbf16>, vector<128x256xf32> -> vector<128x256xf32>
    %c0_12 = arith.constant 0 : index
    %c0_13 = arith.constant 0 : index
    %42 = vector.load %arg6[%c0_12, %c0_13] : memref<1x256xf32, #tpu.memory_space<vmem>>, vector<1x256xf32>
    %43 = vector.broadcast %42 : vector<1x256xf32> to vector<128x256xf32>
    %44 = arith.addf %41, %43 : vector<128x256xf32>
    %cst_14 = arith.constant 0.000000e+00 : f32
    %45 = vector.broadcast %cst_14 : f32 to vector<128x256xf32>
    %46 = arith.maximumf %44, %45 : vector<128x256xf32>
    %47 = arith.truncf %46 : vector<128x256xf32> to vector<128x256xbf16>
    %c0_15 = arith.constant 0 : index
    %c0_16 = arith.constant 0 : index
    %48 = vector.load %arg7[%c0_15, %c0_16] : memref<256x128xbf16, #tpu.memory_space<vmem>>, vector<256x128xbf16>
    %cst_17 = arith.constant dense<0.000000e+00> : vector<128x128xf32>
    %49 = tpu.matmul %47, %48, %cst_17 {dimension_numbers = #tpu.dot_dimension_numbers<[1], [0], [0], [1], [0, 0, 1, 1], [], []>} : vector<128x256xbf16>, vector<256x128xbf16>, vector<128x128xf32> -> vector<128x128xf32>
    %c0_18 = arith.constant 0 : index
    %c0_19 = arith.constant 0 : index
    %50 = vector.load %arg8[%c0_18, %c0_19] : memref<1x128xf32, #tpu.memory_space<vmem>>, vector<1x128xf32>
    %51 = vector.broadcast %50 : vector<1x128xf32> to vector<128x128xf32>
    %52 = arith.addf %49, %51 : vector<128x128xf32>
    %cst_20 = arith.constant 0.000000e+00 : f32
    %53 = vector.broadcast %cst_20 : f32 to vector<128x128xf32>
    %54 = arith.maximumf %52, %53 : vector<128x128xf32>
    %55 = arith.truncf %54 : vector<128x128xf32> to vector<128x128xbf16>
    %c0_21 = arith.constant 0 : index
    %c0_22 = arith.constant 0 : index
    %56 = vector.load %arg9[%c0_21, %c0_22] : memref<128x256xbf16, #tpu.memory_space<vmem>>, vector<128x256xbf16>
    %cst_23 = arith.constant dense<0.000000e+00> : vector<128x256xf32>
    %57 = tpu.matmul %55, %56, %cst_23 {dimension_numbers = #tpu.dot_dimension_numbers<[1], [0], [0], [1], [0, 0, 1, 1], [], []>} : vector<128x128xbf16>, vector<128x256xbf16>, vector<128x256xf32> -> vector<128x256xf32>
    %c0_24 = arith.constant 0 : index
    %c0_25 = arith.constant 0 : index
    %58 = vector.load %arg10[%c0_24, %c0_25] : memref<1x256xf32, #tpu.memory_space<vmem>>, vector<1x256xf32>
    %59 = vector.broadcast %58 : vector<1x256xf32> to vector<128x256xf32>
    %60 = arith.addf %57, %59 : vector<128x256xf32>
    %61 = arith.truncf %60 : vector<128x256xf32> to vector<128x256xbf16>
    %c0_26 = arith.constant 0 : index
    %c0_27 = arith.constant 0 : index
    %62 = vector.load %arg11[%c0_26, %c0_27] : memref<128x256xbf16, #tpu.memory_space<vmem>>, vector<128x256xbf16>
    tpu.vector_store %arg11[%c0_26, %c0_27], %61 {strides = array<i32>} : memref<128x256xbf16, #tpu.memory_space<vmem>>, vector<128x256xbf16>,
    return
  }
  func.func @transform_0(%arg0: i32, %arg1: memref<1xi32, #tpu.memory_space<smem>>) -> (i32, i32) {
    %c0_i32 = arith.constant 0 : i32
    %c0_i32_0 = arith.constant 0 : i32
    return %arg0, %c0_i32 : i32, i32
  }
  func.func @transform_1(%arg0: i32, %arg1: memref<1xi32, #tpu.memory_space<smem>>) -> (i32, i32) {
    %c0_i32 = arith.constant 0 : i32
    %c0_i32_0 = arith.constant 0 : i32
    %c0_i32_1 = arith.constant 0 : i32
    return %c0_i32, %c0_i32_0 : i32, i32
  }
  func.func @transform_2(%arg0: i32, %arg1: memref<1xi32, #tpu.memory_space<smem>>) -> (i32, i32) {
    %c0_i32 = arith.constant 0 : i32
    %c0_i32_0 = arith.constant 0 : i32
    %c0_i32_1 = arith.constant 0 : i32
    return %c0_i32, %c0_i32_0 : i32, i32
  }
  func.func @transform_3(%arg0: i32, %arg1: memref<1xi32, #tpu.memory_space<smem>>) -> (i32, i32) {
    %c0_i32 = arith.constant 0 : i32
    %c0_i32_0 = arith.constant 0 : i32
    %c0_i32_1 = arith.constant 0 : i32
    return %c0_i32, %c0_i32_0 : i32, i32
  }
  func.func @transform_4(%arg0: i32, %arg1: memref<1xi32, #tpu.memory_space<smem>>) -> (i32, i32) {
    %c0_i32 = arith.constant 0 : i32
    %c0_i32_0 = arith.constant 0 : i32
    %c0_i32_1 = arith.constant 0 : i32
    return %c0_i32, %c0_i32_0 : i32, i32
  }
  func.func @transform_5(%arg0: i32, %arg1: memref<1xi32, #tpu.memory_space<smem>>) -> (i32, i32) {
    %c0_i32 = arith.constant 0 : i32
    %c0_i32_0 = arith.constant 0 : i32
    %c0_i32_1 = arith.constant 0 : i32
    return %c0_i32, %c0_i32_0 : i32, i32
  }
  func.func @transform_6(%arg0: i32, %arg1: memref<1xi32, #tpu.memory_space<smem>>) -> (i32, i32) {
    %c0_i32 = arith.constant 0 : i32
    %c0_i32_0 = arith.constant 0 : i32
    %c0_i32_1 = arith.constant 0 : i32
    return %c0_i32, %c0_i32_0 : i32, i32
  }
  func.func @transform_7(%arg0: i32, %arg1: memref<1xi32, #tpu.memory_space<smem>>) -> (i32, i32) {
    %c0_i32 = arith.constant 0 : i32
    %c0_i32_0 = arith.constant 0 : i32
    %c0_i32_1 = arith.constant 0 : i32
    return %c0_i32, %c0_i32_0 : i32, i32
  }
  func.func @transform_8(%arg0: i32, %arg1: memref<1xi32, #tpu.memory_space<smem>>) -> (i32, i32) {
    %c0_i32 = arith.constant 0 : i32
    %c0_i32_0 = arith.constant 0 : i32
    %c0_i32_1 = arith.constant 0 : i32
    return %c0_i32, %c0_i32_0 : i32, i32
  }
  func.func @transform_9(%arg0: i32, %arg1: memref<1xi32, #tpu.memory_space<smem>>) -> (i32, i32) {
    %c0_i32 = arith.constant 0 : i32
    %c0_i32_0 = arith.constant 0 : i32
    return %arg0, %c0_i32 : i32, i32
  }
}

</mosaic_0001>

<bundles_post_ra>
// kernel: denoising_autoencoder_forward.1
= control target key start
LH: loop header
LB: loop body
LE: loop exit
PB: predicated region body
PF: predicated region fallthrough
CT: control target
= control target key end

     0   :  { %s3551_s0 = inlined_call_operand.<no memory space> [shape: s32[1], index: 0, kind: input, shape index: {}]   ;;  %s3552_s1 = inlined_call_operand.hbm [shape: bf16[256,256], index: 1, kind: input, shape index: {}]   ;;  %s3553_s2 = inlined_call_operand.hbm [shape: bf16[256,128], index: 2, kind: input, shape index: {}]   ;;  %s3554_s3 = inlined_call_operand.vmem [shape: f32[1,128], index: 3, kind: input, shape index: {}]   ;;  %s3555_s4 = inlined_call_operand.hbm [shape: bf16[128,256], index: 4, kind: input, shape index: {}]   ;;  %s3556_s5 = inlined_call_operand.vmem [shape: f32[1,256], index: 5, kind: input, shape index: {}]   ;;  %s3557_s6 = inlined_call_operand.hbm [shape: bf16[256,128], index: 6, kind: input, shape index: {}]   ;;  %s3558_s7 = inlined_call_operand.vmem [shape: f32[1,128], index: 7, kind: input, shape index: {}]   ;;  %s3559_s8 = inlined_call_operand.hbm [shape: bf16[128,256], index: 8, kind: input, shape index: {}]   ;;  %s3560_s9 = inlined_call_operand.vmem [shape: f32[1,256], index: 9, kind: input, shape index: {}]   ;;  %s3561_s10 = inlined_call_operand.hbm [shape: bf16[256,256], index: 10, kind: output, shape index: {}]  }
   0x1   :  { %3568 = sst [smem:[#allocation18_spill]] %s3553_s2 }
   0x2   :  { %3569 = sst [smem:[#allocation19_spill]] %s3555_s4 }
   0x3   :  { %3570 = sst [smem:[#allocation20_spill]] %s3557_s6 }
   0x4   :  { %15 = sst [smem:[#allocation3]] %s3551_s0 }
   0x5   :  { %16 = vsyncpa [#allocation5], 0 }
   0x6   :  { %18 = vsyncpa [#allocation5 + $0x1], 0 }
   0x7   :  { %19 = vsyncpa [#allocation8], 0 }
   0x8   :  { %20 = vsyncpa [#allocation11], 0 }
   0x9   :  { %21 = vsyncpa [#allocation6], 0 }
   0xa   :  { %23 = vsyncpa [#allocation6 + $0x1], 0  ;;  %s2946_s15 = smov 0   ;;  %s2948_s16 = smov 0  }
   0xb   :  { %s2950_s17 = smov 0   ;;  %s2952_s18 = smov 0  }
   0xc LB: > { %s2967_s0 = sadd.s32 4294967295, %s2873_s18   ;;  %s2224_s19 = sadd.s32 4294967294, %s2873_s18   ;;  %s2873_s18 = sphi %s2952_s18, %s3597_s18   ;;  %s2869_s17 = sphi %s2950_s17, %s3596_s17   ;;  %s2865_s16 = sphi %s2948_s16, %s3595_s16   ;;  %s2861_s15 = sphi %s2946_s15, %s3594_s15  }
   0xd   : > { %p49_p0 = scmp.ne.s32.totalorder %s2865_s16, %s2861_s15  ;;  %p3562_p1 = scmp.eq.s32.totalorder %s2967_s0, 0 }
   0xe   : > { %p247_p3 = scmp.eq.s32.totalorder %s2224_s19, 1  ;;  %p2225_p5 = scmp.ge.s32.totalorder %s2873_s18, 1 }
   0xf   : > { %p2976_p4 = por %p3562_p1, %p49_p0  ;;  %p254_p7 = scmp.lt.s32.totalorder %s2873_s18, 3 }
  0x10   : > { %p2981_p6 = por %p247_p3, %p49_p0  ;;  %s2875_s23 = smov [#allocation7]  }
  0x11   : > { %s3571_s20 = scalar_select %p2976_p4, 1, 0 }
  0x12   : > { %s3572_s21 = scalar_select %p2981_p6, 1, 0 }
  0x13   : > { %p2986_p8 = pnand %p2225_p5, %p254_p7  ;;  %s266_s24 = sshll.u32 %s2875_s23, 4  ;;  %s267_s24 = int_to_ptr.vmem [resolvable:$true] %s266_s24 }
  0x14   : > { %s2876_s26 = smov [#allocation10]   ;;  %s2877_s28 = smov [#allocation9]  }
  0x15   : > { %s3573_s22 = scalar_select %p2986_p8, 1, 0 }
  0x16   : > { %p2515_p9 = pneg %p2986_p8  ;;  %s298_s27 = sshll.u32 %s2876_s26, 4  ;;  %s299_s27 = int_to_ptr.vmem [resolvable:$true] %s298_s27 }
  0x17   : > { %s282_s29 = sshll.u32 %s2877_s28, 4  ;;  %s2680_s30 = scalar_lea.vmem %s267_s24, 2048  ;;  %s283_s29 = int_to_ptr.vmem [resolvable:$true] %s282_s29 }
  0x18   : > { %p2995_p11 = pnand %p2515_p9, %p3562_p1  ;;  %p2681_p13 = scmp.ne.s32.totalorder %s267_s24, %s2680_s30 }
  0x19   : > { %p2688_p5 = scmp.lt.s32.totalorder %s267_s24, %s267_s24  ;;  %p2689_p7 = scmp.lt.s32.totalorder %s2680_s30, %s2680_s30 }
  0x1a   : > { %p2671_p12 = pneg %p2995_p11 }
  0x1b   : > { %p2690_p9 = por %p2689_p7, %p2688_p5 }
  0x1c   : > { %p2683_p0 = pnand %p2681_p13, %p2671_p12 }
  0x1e   : > { %p2684_p3 = pneg %p2683_p0 }
  0x20   : > { %p2691_p10 = pnand %p2690_p9, %p2684_p3 }
  0x22   : > { %2694 = shalt.err (!%p2691_p10)
}
  0x23   : > { %s2878_s11 = smov 64   ;;  %s2879_s12 = smov 4  }
  0x24   : > { %s3575_s2 = sld [smem:[#allocation18_spill]]  ;;  %s2706_s19 = scalar_lea.vmem %s299_s27, 2048 }
  0x25   : > { %p2707_p1 = scmp.ne.s32.totalorder %s299_s27, %s2706_s19  ;;  %p2714_p2 = scmp.lt.s32.totalorder %s299_s27, %s299_s27 }
  0x26   : > { %p2715_p6 = scmp.lt.s32.totalorder %s2706_s19, %s2706_s19 }
  0x27   : > { %p2709_p13 = pnand %p2707_p1, %p2671_p12 }
  0x28   : > { %p2716_p5 = por %p2715_p6, %p2714_p2 }
  0x29   : > { %p2710_p0 = pneg %p2709_p13 }
  0x2a   : > { %2518 = dma.hbm_to_vmem [thread:$0]  (!%p2995_p11), %s3575_s2, 2048, %s267_s24, [#allocation8], %s2878_s11, %s2878_s11, %s2879_s12  }
  0x2b   : > { %p2717_p3 = pnand %p2716_p5, %p2710_p0 }
  0x2d   : > { %2720 = shalt.err (!%p2717_p3)
}
  0x2e   : > { %s3576_s6 = sld [smem:[#allocation20_spill]]  ;;  %s2732_s24 = scalar_lea.vmem %s283_s29, 2048 }
  0x2f   : > { %p2733_p10 = scmp.ne.s32.totalorder %s283_s29, %s2732_s24  ;;  %p2740_p9 = scmp.lt.s32.totalorder %s283_s29, %s283_s29 }
  0x30   : > { %p2741_p13 = scmp.lt.s32.totalorder %s2732_s24, %s2732_s24 }
  0x31   : > { %p2735_p7 = pnand %p2733_p10, %p2671_p12 }
  0x32   : > { %p2742_p4 = por %p2741_p13, %p2740_p9 }
  0x33   : > { %p2736_p1 = pneg %p2735_p7 }
  0x34   : > { %2524 = dma.hbm_to_vmem [thread:$0]  (!%p2995_p11), %s3576_s6, 2048, %s299_s27, [#allocation11], %s2878_s11, %s2878_s11, %s2879_s12  }
  0x35   : > { %p2743_p2 = pnand %p2742_p4, %p2736_p1 }
  0x37   : > { %2746 = shalt.err (!%p2743_p2)
}
  0x38   : > { %s3564_s28 = smov 128   ;;  %s3565_s30 = smov 8  }
  0x39   : > { %s3577_s4 = sld [smem:[#allocation19_spill]]  ;;  %s2882_s12 = smov [#allocation12]  }
  0x3a   : > { %s314_s13 = sshll.u32 %s2882_s12, 4  ;;  %s315_s13 = int_to_ptr.vmem [resolvable:$true] %s314_s13 }
  0x3b   : > { %s2758_s14 = scalar_lea.vmem %s315_s13, 2048  ;;  %p2766_p5 = scmp.lt.s32.totalorder %s315_s13, %s315_s13 }
  0x3c   : > { %p2759_p6 = scmp.ne.s32.totalorder %s315_s13, %s2758_s14  ;;  %p2767_p3 = scmp.lt.s32.totalorder %s2758_s14, %s2758_s14 }
  0x3e   : > { %p2761_p4 = pnand %p2759_p6, %p2671_p12  ;;  %p2768_p10 = por %p2767_p3, %p2766_p5 }
  0x3f   : > { %2521 = dma.hbm_to_vmem [thread:$0]  (!%p2995_p11), %s3577_s4, 2048, %s283_s29, [#allocation8], %s3564_s28, %s3564_s28, %s3565_s30  }
  0x40   : > { %p2762_p0 = pneg %p2761_p4 }
  0x42   : > { %p2769_p7 = pnand %p2768_p10, %p2762_p0 }
  0x44   : > { %2772 = shalt.err (!%p2769_p7)
}
  0x45   : > { %2527 = dma.hbm_to_vmem [thread:$0]  (!%p2995_p11), %s3559_s8, 2048, %s315_s13, [#allocation11], %s3564_s28, %s3564_s28, %s3565_s30  }
  0x46   : > { %s3040_s23 = sadd.s32 1, %s2873_s18   ;;  %s36_s25 = sadd.s32 1, %s2869_s17 }
  0x47   : > { %s33_s26 = ssub.s32 %s2873_s18, %s3040_s23  ;;  %p43_p12 = scmp.ne.s32.totalorder %s2869_s17, %s2865_s16 }
  0x48   : > { %p34_p1 = scmp.eq.s32.totalorder %s33_s26, 0  ;;  %p44_p9 = scmp.eq.s32.totalorder %s2873_s18, 0 }
  0x49   : > { %p3578_p13 = scmp.eq.s32.totalorder %s2967_s0, 1  ;;  %p2540_p6 = scmp.lt.s32.totalorder %s2873_s18, 2 }
  0x4a   : > { %s3056_s27 = scalar_select %p34_p1, %s2869_s17, %s36_s25  }
  0x4b   : > { %p3050_p2 = por %p3578_p13, %p43_p12  ;;  %p45_p4 = por %p44_p9, %p43_p12 }
  0x4c   : > { %s331_s11 = sand.u32 1, %s2869_s17   ;;  %s2348_s13 = sshll.u32 %s2873_s18, 11 }
  0x4d   : > { %s3579_s24 = scalar_select %p3050_p2, 1, 0 }
  0x4e   : > { %s2231_s12 = sshll.u32 %s331_s11, 7  ;;  %s3063_s19 = scalar_lea.hbm %s3552_s1, %s2348_s13 }
  0x4f   : > { %s335_s26 = scalar_lea.vmem [#allocation4], %s2231_s12  ;;  %p3067_p11 = pnand %p2540_p6, %p45_p4 }
  0x50   : > { %s343_s28 = sshll.u32 %s335_s26, 4  ;;  %s3071_s25 = scalar_lea.sflag [#allocation5], %s331_s11  ;;  %s3065_s28 = int_to_ptr.vmem [resolvable:$true] %s343_s28 }
  0x51   : > { %s2773_s2 = scalar_lea.hbm %s3063_s19, 2048  ;;  %p2775_p5 = pneg %p3067_p11 }
  0x52   : > { %p2774_p0 = scmp.ne.s32.totalorder %s3063_s19, %s2773_s2  ;;  %s2778_s12 = scalar_lea.hbm %s3552_s1, 4096 }
  0x53   : > { %p2779_p7 = scmp.lt.s32.totalorder %s3063_s19, %s3552_s1  ;;  %p2780_p12 = scmp.lt.s32.totalorder %s2778_s12, %s2773_s2 }
  0x54   : > { %p2776_p3 = pnand %p2775_p5, %p2774_p0 }
  0x55   : > { %p2781_p1 = por %p2780_p12, %p2779_p7 }
  0x56   : > { %p2777_p10 = pneg %p2776_p3 }
  0x58   : > { %p2782_p9 = pnand %p2781_p1, %p2777_p10 }
  0x5a   : > { %2785 = shalt.err (!%p2782_p9)
}
  0x5b   : > { %s2786_s11 = scalar_lea.vmem %s3065_s28, 2048  ;;  %s2883_s4 = smov [#allocation4]  }
  0x5c   : > { %p2787_p13 = scmp.ne.s32.totalorder %s3065_s28, %s2786_s11  ;;  %s2791_s6 = sshll.u32 %s2883_s4, 4  ;;  %s2792_s6 = int_to_ptr.vmem [resolvable:$false] %s2791_s6 }
  0x5d   : > { %s2793_s13 = scalar_lea.vmem %s2792_s6, 4096  ;;  %p2794_p0 = scmp.lt.s32.totalorder %s3065_s28, %s2792_s6 }
  0x5e   : > { %p2789_p6 = pnand %p2787_p13, %p2775_p5  ;;  %p2795_p3 = scmp.lt.s32.totalorder %s2793_s13, %s2786_s11 }
  0x60   : > { %p2790_p4 = pneg %p2789_p6  ;;  %p2796_p2 = por %p2795_p3, %p2794_p0 }
  0x62   : > { %p2797_p8 = pnand %p2796_p2, %p2790_p4 }
  0x64   : > { %2800 = shalt.err (!%p2797_p8)
}
  0x65   : > { %s3581_s2 = smov 8   ;;  %s3582_s14 = smov 128  }
  0x66   : > { %2531 = dma.hbm_to_vmem [thread:$0]  (!%p3067_p11), %s3063_s19, 2048, %s3065_s28, %s3071_s25, %s3582_s14, %s3582_s14, %s3581_s2  }
  0x67   : > { %p3583_p5 = scmp.ne.s32.totalorder %s3573_s22, 0 }
  0x68   : > { %s3098_s4 = sand.u32 (!%p3583_p5), 1, %s2865_s16   ;;  %p3584_p8 = scmp.ne.s32.totalorder (!%p3583_p5), %s3571_s20, 0 }
  0x69   : > { %355 = sbr.rel (%p3583_p5) target bundleno = 1084 (0x43c), region = 56  ;;  %s2236_s6 = sshll.u32 (!%p3583_p5), %s3098_s4, 7 }
  0x6a   : > { %s358_s12 = scalar_lea.sflag (!%p3583_p5), [#allocation5], %s3098_s4  ;;  %s3104_s30 = scalar_lea.vmem (!%p3583_p5), [#allocation4], %s2236_s6 }
  0x6e   : > { %2844 = dma.done.wait (%p3584_p8), %s358_s12, 2048  }
  0x6f   : > { %2846 = vsyncadd (%p3584_p8), %s358_s12, 4294965248  ;;  %p3585_p2 = scmp.eq.s32.totalorder %s2967_s0, 0 }
  0x71   : > { %2848 = dma.done.wait (%p3585_p2), [#allocation8], 4096   ;;  %p3586_p11 = pmov %p3585_p2 }
  0x72   : > { %p3587_p10 = pmov %p3585_p2 }
  0x73   : > { %2850 = vsyncadd (%p3586_p11), [#allocation8], 4294963200 }
  0x74   : > { %2852 = dma.done.wait (%p3587_p10), [#allocation11], 4096   ;;  %p3588_p7 = pmov %p3585_p2 }
  0x75   : > { %v431_v0 = vlaneseq  ;;  %s2242_s22 = sshll.u32 %s2967_s0, 7  ;;  %s3131_s20 = sld [smem:[#allocation3]]  ;;  %v2589_v10 = vld [vmem:[#allocation7 + $0x78] sm:$0xff]   ;;  %v2591_v16 = vld [vmem:[#allocation7 + $0x70] sm:$0xff]   ;;  %v2593_v23 = vld [vmem:[#allocation7 + $0x68] sm:$0xff]  }
  0x76   : > { %2854 = vsyncadd (%p3588_p7), [#allocation11], 4294963200  ;;  %v3123_v3 = vstv %s2242_s22  ;;  %v2590_v13 = vld [vmem:[#allocation7 + $0x38] sm:$0xff]   ;;  %2367 = vmatprep.subr.bf16.mxu0 %v2589_v10  ;;  %v2592_v20 = vld [vmem:[#allocation7 + $0x30] sm:$0xff]   ;;  %s3453_s12 = scalar_lea.vmem [#allocation13], %s2236_s6  ;;  %s2366_s6 = sshll.u32 %s2967_s0, 11 }
  0x77   : > { %v3119_v1 = vshrl.u32 %v431_v0, 7  ;;  %v3121_v2 = vand.u32 127, %v431_v0  ;;  %2368 = vmatpush3.bf16.msra.mxu0 %v2590_v13  ;;  %v2594_v30 = vld [vmem:[#allocation7 + $0x28] sm:$0xff]   ;;  %v2595_v32 = vld [vmem:[#allocation7 + $0x60] sm:$0xff]   ;;  %v2597_v50 = vld [vmem:[#allocation7 + $0x58] sm:$0xff]   ;;  %s2099_s0 = scalar_lea.sflag [#allocation6], %s3098_s4 }
  0x78   : > { %2369 = vmatprep.subr.bf16.mxu0 %v2591_v16  ;;  %v2596_v45 = vld [vmem:[#allocation7 + $0x20] sm:$0xff]   ;;  %v2598_v63 = vld [vmem:[#allocation7 + $0x18] sm:$0xff]   ;;  %p3591_p1 = scmp.ne.s32.totalorder %s3579_s24, 0  ;;  %s2885_s25 = smov [#allocation13]  }
  0x79   : > { %v433_v4 = vadd.s32 8, %v3119_v1  ;;  %v434_v5 = vadd.s32 16, %v3119_v1  ;;  %v435_v6 = vadd.s32 24, %v3119_v1  ;;  %v436_v7 = vadd.s32 32, %v3119_v1  ;;  %s2805_s29 = sshll.u32 %s2885_s25, 4  ;;  %s2806_s29 = int_to_ptr.vmem [resolvable:$false] %s2805_s29 }
  0x7a   : > { %v453_v8 = vadd.s32 %v3123_v3, %v3119_v1  ;;  %v437_v9 = vadd.s32 40, %v3119_v1  ;;  %v3135_v11 = vadd.s32 128, %v3121_v2  ;;  %v438_v15 = vadd.s32 48, %v3119_v1  ;;  %s2807_s26 = scalar_lea.vmem %s2806_s29, 4096 }
  0x7b   : > { %v454_v12 = vadd.s32 %v3123_v3, %v433_v4  ;;  %v455_v14 = vadd.s32 %v3123_v3, %v434_v5  ;;  %v456_v17 = vadd.s32 %v3123_v3, %v435_v6  ;;  %v457_v18 = vadd.s32 %v3123_v3, %v436_v7  ;;  %2370 = vmatpush3.bf16.msra.mxu0 %v2592_v20  ;;  %v2599_v7 = vld [vmem:[#allocation7 + $0x50] sm:$0xff]   ;;  %s518_s28 = smul.u32 2654435761, %s3131_s20 }
  0x7c   : > { %v439_v19 = vadd.s32 56, %v3119_v1  ;;  %v469_v21 = vmul.u32 256, %v453_v8  ;;  %v458_v22 = vadd.s32 %v3123_v3, %v437_v9  ;;  %v459_v26 = vadd.s32 %v3123_v3, %v438_v15  ;;  %2371 = vmatprep.subr.bf16.mxu0 %v2593_v23 }
  0x7d   : > { %v470_v24 = vmul.u32 256, %v454_v12  ;;  %v471_v25 = vmul.u32 256, %v455_v14  ;;  %v440_v36 = vadd.s32 64, %v3119_v1  ;;  %v441_v40 = vadd.s32 72, %v3119_v1 }
  0x7e   : > { %v472_v27 = vmul.u32 256, %v456_v17  ;;  %v473_v28 = vmul.u32 256, %v457_v18  ;;  %v460_v29 = vadd.s32 %v3123_v3, %v439_v19  ;;  %v485_v33 = vadd.s32 %v469_v21, %v3121_v2 }
  0x7f   : > { %v474_v31 = vmul.u32 256, %v458_v22  ;;  %v486_v34 = vadd.s32 %v469_v21, %v3135_v11  ;;  %v487_v35 = vadd.s32 %v470_v24, %v3121_v2  ;;  %v488_v37 = vadd.s32 %v470_v24, %v3135_v11  ;;  %2372 = vmatpush3.bf16.msra.mxu0 %v2594_v30  ;;  %v2600_v21 = vld [vmem:[#allocation7 + $0x10] sm:$0xff]  }
  0x80   : > { %v489_v38 = vadd.s32 %v471_v25, %v3121_v2  ;;  %v475_v39 = vmul.u32 256, %v459_v26  ;;  %v490_v41 = vadd.s32 %v471_v25, %v3135_v11  ;;  %v476_v42 = vmul.u32 256, %v460_v29  ;;  %2373 = vmatprep.subr.bf16.mxu0 %v2595_v32  ;;  %v2601_v26 = vld [vmem:[#allocation7 + $0x48] sm:$0xff]  }
  0x81   : > { %v461_v43 = vadd.s32 %v3123_v3, %v440_v36  ;;  %v442_v44 = vadd.s32 80, %v3119_v1  ;;  %v491_v46 = vadd.s32 %v472_v27, %v3121_v2  ;;  %v492_v47 = vadd.s32 %v472_v27, %v3135_v11 }
  0x82   : > { %v462_v48 = vadd.s32 %v3123_v3, %v441_v40  ;;  %v443_v49 = vadd.s32 88, %v3119_v1  ;;  %v3161_v51 = vadd.s32 %v473_v28, %v3121_v2  ;;  %v3164_v52 = vadd.s32 %v473_v28, %v3135_v11 }
  0x83   : > { %v477_v53 = vmul.u32 256, %v461_v43  ;;  %v463_v54 = vadd.s32 %v3123_v3, %v442_v44  ;;  %v3168_v55 = vadd.s32 %v474_v31, %v3121_v2  ;;  %v3171_v56 = vadd.s32 %v474_v31, %v3135_v11  ;;  %2374 = vmatpush3.bf16.msra.mxu0 %v2596_v45  ;;  %v2602_v31 = vld [vmem:[#allocation7 + $0x8] sm:$0xff]  }
  0x84   : > { %v478_v57 = vmul.u32 256, %v462_v48  ;;  %v464_v58 = vadd.s32 %v3123_v3, %v443_v49  ;;  %v3175_v59 = vadd.s32 %v475_v39, %v3121_v2  ;;  %v3178_v60 = vadd.s32 %v475_v39, %v3135_v11  ;;  %2375 = vmatprep.subr.bf16.mxu0 %v2597_v50  ;;  %v2607_v48 = vld [vmem:[#allocation9 + $0x70] ss:$8 sps:$4 sm:$0xff]  }
  0x85   : > { %v3181_v61 = vadd.s32 %v476_v42, %v3121_v2  ;;  %v479_v62 = vmul.u32 256, %v463_v54  ;;  %v3184_v0 = vadd.s32 %v476_v42, %v3135_v11  ;;  %v3187_v4 = vadd.s32 %v477_v53, %v3121_v2  ;;  %v2610_v54 = vld [vmem:[#allocation9 + $0x60] ss:$8 sps:$4 sm:$0xff]  }
  0x86   : > { %v3190_v5 = vadd.s32 %v477_v53, %v3135_v11  ;;  %v480_v6 = vmul.u32 256, %v464_v58  ;;  %v3194_v8 = vadd.s32 %v478_v57, %v3121_v2  ;;  %v3197_v9 = vadd.s32 %v478_v57, %v3135_v11  ;;  %v2608_v53 = vld [vmem:[#allocation9 + $0x64] ss:$8 sps:$4 sm:$0xff]  }
  0x87   : > { %v3200_v10 = vadd.s32 %v479_v62, %v3121_v2  ;;  %v444_v12 = vadd.s32 96, %v3119_v1  ;;  %v3204_v13 = vadd.s32 %v479_v62, %v3135_v11  ;;  %v3213_v16 = vadd.s32 104, %v3119_v1  ;;  %2376 = vmatpush3.bf16.msra.mxu0 %v2598_v63  ;;  %v2604_v57 = vld [vmem:[#allocation7] sm:$0xff]  }
  0x88   : > { %v3207_v14 = vadd.s32 %v480_v6, %v3121_v2  ;;  %v3210_v15 = vadd.s32 %v480_v6, %v3135_v11  ;;  %v3215_v17 = vstv %s518_s28  ;;  %v3221_v19 = vadd.s32 112, %v3119_v1  ;;  %2377 = vmatprep.subr.bf16.mxu0 %v2599_v7  ;;  %s3505_s28 = scalar_lea.hbm %s3561_s10, %s2366_s6 }
  0x89   : > { %v3218_v18 = vadd.s32 %v3123_v3, %v444_v12  ;;  %v3224_v20 = vadd.s32 120, %v3119_v1  ;;  %v520_v22 = vxor.u32 %v3215_v17, %v485_v33  ;;  %v521_v23 = vxor.u32 %v3215_v17, %v486_v34  ;;  %v2603_v34 = vld [vmem:[#allocation7 + $0x40] sm:$0xff]  }
  0x8a   : > { %v522_v24 = vxor.u32 %v3215_v17, %v487_v35  ;;  %v523_v25 = vxor.u32 %v3215_v17, %v488_v37  ;;  %v524_v27 = vxor.u32 %v3215_v17, %v489_v38  ;;  %v525_v28 = vxor.u32 %v3215_v17, %v490_v41  ;;  %v2605_v41 = vld [vmem:[#allocation9 + $0x74] ss:$8 sps:$4 sm:$0xff]  }
  0x8b   : > { %v526_v29 = vxor.u32 %v3215_v17, %v491_v46  ;;  %v527_v30 = vxor.u32 %v3215_v17, %v492_v47  ;;  %v552_v32 = vshrl.u32 %v520_v22, 16  ;;  %v553_v36 = vshrl.u32 %v521_v23, 16  ;;  %2378 = vmatpush3.bf16.msra.mxu0 %v2600_v21  ;;  %1348 = vmatprep.subr.bf16.mxu1 %v2605_v41 }
  0x8c   : > { %v554_v33 = vshrl.u32 %v522_v24, 16  ;;  %v555_v39 = vshrl.u32 %v523_v25, 16  ;;  %v556_v40 = vshrl.u32 %v524_v27, 16  ;;  %v557_v35 = vshrl.u32 %v525_v28, 16  ;;  %2379 = vmatprep.subr.bf16.mxu0 %v2601_v26  ;;  %1349 = vmatpush1.bf16.msra.mxu1 %v2607_v48  ;;  %v2616_v48 = vld [vmem:[#allocation9 + $0x40] ss:$8 sps:$4 sm:$0xff]  }
  0x8d   : > { %v558_v42 = vshrl.u32 %v526_v29, 16  ;;  %v559_v37 = vshrl.u32 %v527_v30, 16  ;;  %v584_v43 = vxor.u32 %v552_v32, %v520_v22  ;;  %v585_v44 = vxor.u32 %v553_v36, %v521_v23  ;;  %v2611_v23 = vld [vmem:[#allocation9 + $0x54] ss:$8 sps:$4 sm:$0xff]   ;;  %1350 = vmatprep.subr.bf16.mxu1 %v2608_v53 }
  0x8e   : > { %v586_v38 = vxor.u32 %v554_v33, %v522_v24  ;;  %v587_v45 = vxor.u32 %v555_v39, %v523_v25  ;;  %v588_v46 = vxor.u32 %v556_v40, %v524_v27  ;;  %v589_v47 = vxor.u32 %v557_v35, %v525_v28  ;;  %v2614_v35 = vld [vmem:[#allocation9 + $0x44] ss:$8 sps:$4 sm:$0xff]   ;;  %v2617_v53 = vld [vmem:[#allocation9 + $0x34] ss:$8 sps:$4 sm:$0xff]  }
  0x8f   : > { %v590_v49 = vxor.u32 %v558_v42, %v526_v29  ;;  %v591_v50 = vxor.u32 %v559_v37, %v527_v30  ;;  %v616_v58 = vmul.u32 2146121005, %v584_v43  ;;  %v617_v62 = vmul.u32 2146121005, %v585_v44  ;;  %2380 = vmatpush3.bf16.msra.mxu0 %v2602_v31  ;;  %v2613_v31 = vld [vmem:[#allocation9 + $0x50] ss:$8 sps:$4 sm:$0xff]  }
  0x90   : > { %v3236_v63 = vxor.u32 %v3215_v17, %v3161_v51  ;;  %v3240_v6 = vxor.u32 %v3215_v17, %v3164_v52  ;;  %v618_v7 = vmul.u32 2146121005, %v586_v38  ;;  %v619_v12 = vmul.u32 2146121005, %v587_v45  ;;  %2381 = vmatprep.subr.bf16.mxu0 %v2603_v34  ;;  %1351 = vmatpush1.bf16.msra.mxu1 %v2610_v54 }
  0x91   : > { %v3244_v21 = vxor.u32 %v3215_v17, %v3168_v55  ;;  %v3248_v22 = vxor.u32 %v3215_v17, %v3171_v56  ;;  %v648_v51 = vshrl.u32 %v616_v58, 15  ;;  %v649_v24 = vshrl.u32 %v617_v62, 15  ;;  %1352 = vmatprep.subr.bf16.mxu1 %v2611_v23 }
  0x92   : > { %v620_v25 = vmul.u32 2146121005, %v588_v46  ;;  %v621_v26 = vmul.u32 2146121005, %v589_v47  ;;  %v650_v52 = vshrl.u32 %v618_v7, 15  ;;  %v651_v27 = vshrl.u32 %v619_v12, 15 }
  0x93   : > { %v622_v28 = vmul.u32 2146121005, %v590_v49  ;;  %v623_v29 = vmul.u32 2146121005, %v591_v50  ;;  %v680_v30 = vxor.u32 %v648_v51, %v616_v58  ;;  %v681_v55 = vxor.u32 %v649_v24, %v617_v62  ;;  %2382 = vmatpush3.bf16.msra.mxu0 %v2604_v57  ;;  %v415_v24 = vld [vmem:[%s3104_s30] sm:$0xff] }
  0x94   : > { %v652_v32 = vshrl.u32 %v620_v25, 15  ;;  %v653_v36 = vshrl.u32 %v621_v26, 15  ;;  %v682_v33 = vxor.u32 %v650_v52, %v618_v7  ;;  %v683_v56 = vxor.u32 %v651_v27, %v619_v12  ;;  %1353 = vmatpush1.bf16.msra.mxu1 %v2613_v31  ;;  %v418_v31 = vld [vmem:[%s3104_s30 + $0x18] sm:$0xff] }
  0x95   : > { %v654_v39 = vshrl.u32 %v622_v28, 15  ;;  %v655_v40 = vshrl.u32 %v623_v29, 15  ;;  %v712_v42 = vmul.u32 2221713035, %v680_v30  ;;  %v713_v37 = vmul.u32 2221713035, %v681_v55  ;;  %1354 = vmatprep.subr.bf16.mxu1 %v2614_v35 }
  0x96   : > { %v684_v43 = vxor.u32 %v652_v32, %v620_v25  ;;  %v685_v34 = vxor.u32 %v653_v36, %v621_v26  ;;  %v714_v44 = vmul.u32 2221713035, %v682_v33  ;;  %v715_v38 = vmul.u32 2221713035, %v683_v56  ;;  %v417_v56 = vld [vmem:[%s3104_s30 + $0x10] sm:$0xff] }
  0x97   : > { %v686_v45 = vxor.u32 %v654_v39, %v622_v28  ;;  %v687_v41 = vxor.u32 %v655_v40, %v623_v29  ;;  %v744_v46 = vshrl.u32 %v712_v42, 16  ;;  %v745_v47 = vshrl.u32 %v713_v37, 16  ;;  %v416_v28 = vld [vmem:[%s3104_s30 + $0x8] sm:$0xff] }
  0x98   : > { %v716_v49 = vmul.u32 2221713035, %v684_v43  ;;  %v717_v50 = vmul.u32 2221713035, %v685_v34  ;;  %v746_v54 = vshrl.u32 %v714_v44, 16  ;;  %v747_v58 = vshrl.u32 %v715_v38, 16  ;;  %1355 = vmatpush1.bf16.msra.mxu1 %v2616_v48 }
  0x99   : > { %v718_v57 = vmul.u32 2221713035, %v686_v45  ;;  %v719_v62 = vmul.u32 2221713035, %v687_v41  ;;  %v776_v7 = vxor.u32 %v744_v46, %v712_v42  ;;  %v777_v12 = vxor.u32 %v745_v47, %v713_v37  ;;  %1356 = vmatprep.subr.bf16.mxu1 %v2617_v53 }
  0x9a   : > { %v748_v23 = vshrl.u32 %v716_v49, 16  ;;  %v749_v51 = vshrl.u32 %v717_v50, 16  ;;  %v778_v25 = vxor.u32 %v746_v54, %v714_v44  ;;  %v779_v26 = vxor.u32 %v747_v58, %v715_v38 }
  0x9b   : > { %v750_v52 = vshrl.u32 %v718_v57, 16  ;;  %v751_v27 = vshrl.u32 %v719_v62, 16  ;;  %v808_v29 = vshrl.u32 %v776_v7, 8  ;;  %v809_v30 = vshrl.u32 %v777_v12, 8 }
  0x9c   : > { %v780_v55 = vxor.u32 %v748_v23, %v716_v49  ;;  %v781_v32 = vxor.u32 %v749_v51, %v717_v50  ;;  %v810_v36 = vshrl.u32 %v778_v25, 8  ;;  %v811_v33 = vshrl.u32 %v779_v26, 8 }
  0x9d   : > { %v782_v39 = vxor.u32 %v750_v52, %v718_v57  ;;  %v783_v40 = vxor.u32 %v751_v27, %v719_v62  ;;  %vm840_vm0 = vcmp.ge.s32.totalorder %v808_v29, 1677722  ;;  %vm841_vm1 = vcmp.ge.s32.totalorder %v809_v30, 1677722 }
  0x9e   : > { %v812_v35 = vshrl.u32 %v780_v55, 8  ;;  %v813_v42 = vshrl.u32 %v781_v32, 8  ;;  %vm842_vm2 = vcmp.ge.s32.totalorder %v810_v36, 1677722  ;;  %vm843_vm3 = vcmp.ge.s32.totalorder %v811_v33, 1677722  ;;  %vm872_vm4 = vmpackc.low %vm841_vm1, %vm840_vm0 }
  0x9f   : > { %v814_v37 = vshrl.u32 %v782_v39, 8  ;;  %v815_v43 = vshrl.u32 %v783_v40, 8  ;;  %vm873_vm5 = vmpackc.low %vm843_vm3, %vm842_vm2  ;;  %v888_v34 = vsel %vm872_vm4, %v415_v24, 0  ;;  %v560_v44 = vshrl.u32 %v3236_v63, 16 }
  0xa0   : > { %vm844_vm6 = vcmp.ge.s32.totalorder %v812_v35, 1677722  ;;  %vm845_vm7 = vcmp.ge.s32.totalorder %v813_v42, 1677722  ;;  %v889_v38 = vsel %vm873_vm5, %v416_v28, 0  ;;  %v561_v45 = vshrl.u32 %v3240_v6, 16 }
  0xa1   : > { %vm846_vm8 = vcmp.ge.s32.totalorder %v814_v37, 1677722  ;;  %vm847_vm9 = vcmp.ge.s32.totalorder %v815_v43, 1677722  ;;  %vm874_vm10 = vmpackc.low %vm845_vm7, %vm844_vm6  ;;  %v2244_v41 = vcombine.low %v888_v34, %v889_v38  ;;  %v2245_v48 = vcombine.high %v888_v34, %v889_v38 }
  0xa2   : > { %vm875_vm11 = vmpackc.low %vm847_vm9, %vm846_vm8  ;;  %v890_v46 = vsel %vm874_vm10, %v417_v56, 0  ;;  %v562_v47 = vshrl.u32 %v3244_v21, 16  ;;  %v563_v50 = vshrl.u32 %v3248_v22, 16  ;;  %v592_v53 = vxor.u32 %v560_v44, %v3236_v63 }
  0xa3   : > { %v891_v49 = vsel %vm875_vm11, %v418_v31, 0  ;;  %v593_v54 = vxor.u32 %v561_v45, %v3240_v6  ;;  %1151 = vmatprep.mubr.bf16.mxu0 %v2245_v48  ;;  %v532_v7 = vxor.u32 %v3215_v17, %v3175_v59  ;;  %v533_v24 = vxor.u32 %v3215_v17, %v3178_v60 }
  0xa4   : > { %v2247_v58 = vcombine.high %v890_v46, %v891_v49  ;;  %v2246_v57 = vcombine.low %v890_v46, %v891_v49  ;;  %v594_v62 = vxor.u32 %v562_v47, %v3244_v21  ;;  %1152 = vmatmul.mubr.bf16.vlgmr.msra.gmra.mxu0 %v2244_v41  ;;  %v595_v12 = vxor.u32 %v563_v50, %v3248_v22 }
  0xa5   : > { %v624_v23 = vmul.u32 2146121005, %v592_v53  ;;  %v625_v51 = vmul.u32 2146121005, %v593_v54  ;;  %v534_v6 = vxor.u32 %v3215_v17, %v3181_v61  ;;  %v535_v25 = vxor.u32 %v3215_v17, %v3184_v0 }
  0xa6   : > { %1159 = vmatprep.mubr.bf16.mxu0 %v2247_v58  ;;  %v626_v63 = vmul.u32 2146121005, %v594_v62  ;;  %v564_v21 = vshrl.u32 %v532_v7, 16  ;;  %v627_v26 = vmul.u32 2146121005, %v595_v12  ;;  %v565_v27 = vshrl.u32 %v533_v24, 16 }
  0xa7   : > { %v656_v52 = vshrl.u32 %v624_v23, 15  ;;  %v657_v59 = vshrl.u32 %v625_v51, 15  ;;  %v566_v22 = vshrl.u32 %v534_v6, 16  ;;  %v567_v29 = vshrl.u32 %v535_v25, 16  ;;  %v419_v58 = vld [vmem:[%s3104_s30 + $0x20] sm:$0xff] }
  0xa8   : > { %v658_v28 = vshrl.u32 %v626_v63, 15  ;;  %v596_v30 = vxor.u32 %v564_v21, %v532_v7  ;;  %v659_v55 = vshrl.u32 %v627_v26, 15  ;;  %v597_v36 = vxor.u32 %v565_v27, %v533_v24 }
  0xa9   : > { %v688_v32 = vxor.u32 %v656_v52, %v624_v23  ;;  %v689_v60 = vxor.u32 %v657_v59, %v625_v51  ;;  %v598_v56 = vxor.u32 %v566_v22, %v534_v6  ;;  %v599_v39 = vxor.u32 %v567_v29, %v535_v25 }
  0xaa   : > { %v690_v33 = vxor.u32 %v658_v28, %v626_v63  ;;  %v628_v61 = vmul.u32 2146121005, %v596_v30  ;;  %v691_v40 = vxor.u32 %v659_v55, %v627_v26  ;;  %v3272_v35 = vxor.u32 %v3215_v17, %v3187_v4  ;;  %v420_v63 = vld [vmem:[%s3104_s30 + $0x28] sm:$0xff] }
  0xab   : > { %v720_v31 = vmul.u32 2221713035, %v688_v32  ;;  %v721_v0 = vmul.u32 2221713035, %v689_v60  ;;  %v3276_v34 = vxor.u32 %v3215_v17, %v3190_v5  ;;  %v538_v59 = vxor.u32 %v3215_v17, %v3194_v8 }
  0xac   : > { %v722_v42 = vmul.u32 2221713035, %v690_v33  ;;  %v629_v37 = vmul.u32 2146121005, %v597_v36  ;;  %v660_v43 = vshrl.u32 %v628_v61, 15  ;;  %1160 = vmatmul.mubr.bf16.gmra.mxu0 %v2246_v57  ;;  %v539_v55 = vxor.u32 %v3215_v17, %v3197_v9 }
  0xad   : > { %v723_v44 = vmul.u32 2221713035, %v691_v40  ;;  %v752_v38 = vshrl.u32 %v720_v31, 16  ;;  %v753_v45 = vshrl.u32 %v721_v0, 16  ;;  %v630_v41 = vmul.u32 2146121005, %v598_v56 }
  0xae   : > { %v754_v48 = vshrl.u32 %v722_v42, 16  ;;  %v631_v46 = vmul.u32 2146121005, %v599_v39  ;;  %v661_v47 = vshrl.u32 %v629_v37, 15  ;;  %v692_v49 = vxor.u32 %v660_v43, %v628_v61  ;;  %v422_v43 = vld [vmem:[%s3104_s30 + $0x38] sm:$0xff] }
  0xaf   : > { %v755_v4 = vshrl.u32 %v723_v44, 16  ;;  %v784_v50 = vxor.u32 %v752_v38, %v720_v31  ;;  %v785_v53 = vxor.u32 %v753_v45, %v721_v0  ;;  %v662_v54 = vshrl.u32 %v630_v41, 15  ;;  %v421_v0 = vld [vmem:[%s3104_s30 + $0x30] sm:$0xff] }
  0xb0   : > { %v786_v62 = vxor.u32 %v754_v48, %v722_v42  ;;  %v663_v7 = vshrl.u32 %v631_v46, 15  ;;  %v693_v12 = vxor.u32 %v661_v47, %v629_v37  ;;  %v724_v5 = vmul.u32 2221713035, %v692_v49 }
  0xb1   : > { %v787_v23 = vxor.u32 %v755_v4, %v723_v44  ;;  %v816_v57 = vshrl.u32 %v784_v50, 8  ;;  %v817_v51 = vshrl.u32 %v785_v53, 8  ;;  %v694_v24 = vxor.u32 %v662_v54, %v630_v41 }
  0xb2   : > { %v818_v6 = vshrl.u32 %v786_v62, 8  ;;  %v695_v25 = vxor.u32 %v663_v7, %v631_v46  ;;  %v725_v21 = vmul.u32 2221713035, %v693_v12  ;;  %v756_v26 = vshrl.u32 %v724_v5, 16 }
  0xb3   : > { %v819_v52 = vshrl.u32 %v787_v23, 8  ;;  %vm848_vm12 = vcmp.ge.s32.totalorder %v816_v57, 1677722  ;;  %vm849_vm13 = vcmp.ge.s32.totalorder %v817_v51, 1677722  ;;  %v568_v33 = vshrl.u32 %v3272_v35, 16 }
  0xb4   : > { %vm850_vm14 = vcmp.ge.s32.totalorder %v818_v6, 1677722  ;;  %vm876_vm15 = vmpackc.low %vm849_vm13, %vm848_vm12  ;;  %v726_v27 = vmul.u32 2221713035, %v694_v24  ;;  %v727_v28 = vmul.u32 2221713035, %v695_v25  ;;  %v788_v22 = vxor.u32 %v756_v26, %v724_v5 }
  0xb5   : > { %vm851_vm0 = vcmp.ge.s32.totalorder %v819_v52, 1677722  ;;  %v892_v29 = vsel %vm876_vm15, %v419_v58, 0  ;;  %v757_v30 = vshrl.u32 %v725_v21, 16  ;;  %v569_v39 = vshrl.u32 %v3276_v34, 16 }
  0xb6   : > { %vm877_vm1 = vmpackc.low %vm851_vm0, %vm850_vm14  ;;  %v758_v32 = vshrl.u32 %v726_v27, 16  ;;  %v759_v60 = vshrl.u32 %v727_v28, 16  ;;  %v820_v36 = vshrl.u32 %v788_v22, 8  ;;  %v570_v61 = vshrl.u32 %v538_v59, 16 }
  0xb7   : > { %v893_v8 = vsel %vm877_vm1, %v420_v63, 0  ;;  %v789_v56 = vxor.u32 %v757_v30, %v725_v21  ;;  %v571_v38 = vshrl.u32 %v539_v55, 16  ;;  %v600_v45 = vxor.u32 %v568_v33, %v3272_v35 }
  0xb8   : > { %v2249_v40 = vcombine.high %v892_v29, %v893_v8  ;;  %v2248_v31 = vcombine.low %v892_v29, %v893_v8  ;;  %v790_v42 = vxor.u32 %v758_v32, %v726_v27  ;;  %v791_v37 = vxor.u32 %v759_v60, %v727_v28 }
  0xb9   : > { %v821_v44 = vshrl.u32 %v789_v56, 8  ;;  %vm3288_vm2 = vcmp.ge.s32.totalorder %v820_v36, 1677722  ;;  %v601_v46 = vxor.u32 %v569_v39, %v3276_v34  ;;  %v602_v47 = vxor.u32 %v570_v61, %v538_v59 }
  0xba   : > { %1167 = vmatprep.mubr.bf16.mxu0 %v2249_v40  ;;  %v822_v41 = vshrl.u32 %v790_v42, 8  ;;  %v823_v48 = vshrl.u32 %v791_v37, 8  ;;  %v603_v49 = vxor.u32 %v571_v38, %v539_v55  ;;  %v632_v4 = vmul.u32 2146121005, %v600_v45 }
  0xbb   : > { %1168 = vmatmul.mubr.bf16.gmra.mxu0 %v2248_v31  ;;  %vm853_vm3 = vcmp.ge.s32.totalorder %v821_v44, 1677722  ;;  %v540_v50 = vxor.u32 %v3215_v17, %v3200_v10  ;;  %v633_v53 = vmul.u32 2146121005, %v601_v46  ;;  %v541_v35 = vxor.u32 %v3215_v17, %v3204_v13  ;;  %v423_v46 = vld [vmem:[%s3104_s30 + $0x40] sm:$0xff] }
  0xbc   : > { %vm854_vm4 = vcmp.ge.s32.totalorder %v822_v41, 1677722  ;;  %vm855_vm5 = vcmp.ge.s32.totalorder %v823_v48, 1677722  ;;  %vm878_vm6 = vmpackc.low %vm853_vm3, %vm3288_vm2  ;;  %v634_v34 = vmul.u32 2146121005, %v602_v47  ;;  %v542_v5 = vxor.u32 %v3215_v17, %v3207_v14 }
  0xbd   : > { %vm879_vm7 = vmpackc.low %vm855_vm5, %vm854_vm4  ;;  %v894_v54 = vsel %vm878_vm6, %v421_v0, 0  ;;  %v635_v58 = vmul.u32 2146121005, %v603_v49  ;;  %v664_v62 = vshrl.u32 %v632_v4, 15  ;;  %v665_v12 = vshrl.u32 %v633_v53, 15  ;;  %v424_v47 = vld [vmem:[%s3104_s30 + $0x48] sm:$0xff] }
  0xbe   : > { %v895_v7 = vsel %vm879_vm7, %v422_v43, 0  ;;  %v543_v10 = vxor.u32 %v3215_v17, %v3210_v15  ;;  %v666_v51 = vshrl.u32 %v634_v34, 15  ;;  %v572_v13 = vshrl.u32 %v540_v50, 16 }
  0xbf   : > { %v2251_v23 = vcombine.high %v894_v54, %v895_v7  ;;  %v2250_v57 = vcombine.low %v894_v54, %v895_v7  ;;  %v667_v24 = vshrl.u32 %v635_v58, 15  ;;  %v696_v63 = vxor.u32 %v664_v62, %v632_v4 }
  0xc0   : > { %v697_v6 = vxor.u32 %v665_v12, %v633_v53  ;;  %v573_v25 = vshrl.u32 %v541_v35, 16  ;;  %v698_v21 = vxor.u32 %v666_v51, %v634_v34  ;;  %v574_v52 = vshrl.u32 %v542_v5, 16 }
  0xc1   : > { %1175 = vmatprep.mubr.bf16.mxu0 %v2251_v23  ;;  %v699_v26 = vxor.u32 %v667_v24, %v635_v58  ;;  %v575_v59 = vshrl.u32 %v543_v10, 16  ;;  %v728_v27 = vmul.u32 2221713035, %v696_v63  ;;  %v604_v22 = vxor.u32 %v572_v13, %v540_v50 }
  0xc2   : > { %v729_v28 = vmul.u32 2221713035, %v697_v6  ;;  %v605_v14 = vxor.u32 %v573_v25, %v541_v35  ;;  %v730_v29 = vmul.u32 2221713035, %v698_v21  ;;  %v606_v30 = vxor.u32 %v574_v52, %v542_v5 }
  0xc3   : > { %1176 = vmatmul.mubr.bf16.gmra.mxu0 %v2250_v57  ;;  %v731_v15 = vmul.u32 2221713035, %v699_v26  ;;  %v607_v55 = vxor.u32 %v575_v59, %v543_v10  ;;  %v760_v32 = vshrl.u32 %v728_v27, 16  ;;  %v636_v36 = vmul.u32 2146121005, %v604_v22 }
  0xc4   : > { %v761_v60 = vshrl.u32 %v729_v28, 16  ;;  %v637_v33 = vmul.u32 2146121005, %v605_v14  ;;  %v762_v8 = vshrl.u32 %v730_v29, 16  ;;  %v638_v39 = vmul.u32 2146121005, %v606_v30 }
  0xc5   : > { %v763_v56 = vshrl.u32 %v731_v15, 16  ;;  %v639_v61 = vmul.u32 2146121005, %v607_v55  ;;  %v792_v40 = vxor.u32 %v760_v32, %v728_v27  ;;  %v668_v0 = vshrl.u32 %v636_v36, 15 }
  0xc6   : > { %v793_v31 = vxor.u32 %v761_v60, %v729_v28  ;;  %v669_v42 = vshrl.u32 %v637_v33, 15  ;;  %v794_v37 = vxor.u32 %v762_v8, %v730_v29  ;;  %v670_v44 = vshrl.u32 %v638_v39, 15  ;;  %v425_v29 = vld [vmem:[%s3104_s30 + $0x50] sm:$0xff] }
  0xc7   : > { %v795_v43 = vxor.u32 %v763_v56, %v731_v15  ;;  %v671_v9 = vshrl.u32 %v639_v61, 15  ;;  %v824_v38 = vshrl.u32 %v792_v40, 8  ;;  %v700_v41 = vxor.u32 %v668_v0, %v636_v36  ;;  %v426_v15 = vld [vmem:[%s3104_s30 + $0x58] sm:$0xff] }
  0xc8   : > { %v825_v45 = vshrl.u32 %v793_v31, 8  ;;  %v701_v48 = vxor.u32 %v669_v42, %v637_v33  ;;  %v826_v49 = vshrl.u32 %v794_v37, 8  ;;  %v702_v50 = vxor.u32 %v670_v44, %v638_v39 }
  0xc9   : > { %v827_v4 = vshrl.u32 %v795_v43, 8  ;;  %v703_v53 = vxor.u32 %v671_v9, %v639_v61  ;;  %vm856_vm8 = vcmp.ge.s32.totalorder %v824_v38, 1677722  ;;  %v732_v35 = vmul.u32 2221713035, %v700_v41 }
  0xca   : > { %vm857_vm9 = vcmp.ge.s32.totalorder %v825_v45, 1677722  ;;  %v466_v54 = vadd.s32 %v3123_v3, %v3213_v16  ;;  %vm858_vm10 = vcmp.ge.s32.totalorder %v826_v49, 1677722  ;;  %v733_v34 = vmul.u32 2221713035, %v701_v48 }
  0xcb   : > { %vm859_vm11 = vcmp.ge.s32.totalorder %v827_v4, 1677722  ;;  %vm880_vm12 = vmpackc.low %vm857_vm9, %vm856_vm8  ;;  %v467_v58 = vadd.s32 %v3123_v3, %v3221_v19  ;;  %v734_v7 = vmul.u32 2221713035, %v702_v50  ;;  %v735_v12 = vmul.u32 2221713035, %v703_v53 }
  0xcc   : > { %vm881_vm13 = vmpackc.low %vm859_vm11, %vm858_vm10  ;;  %v896_v62 = vsel %vm880_vm12, %v423_v46, 0  ;;  %v764_v5 = vshrl.u32 %v732_v35, 16  ;;  %v765_v23 = vshrl.u32 %v733_v34, 16  ;;  %v481_v57 = vmul.u32 256, %v3218_v18 }
  0xcd   : > { %v897_v10 = vsel %vm881_vm13, %v424_v47, 0  ;;  %v482_v51 = vmul.u32 256, %v466_v54  ;;  %v766_v16 = vshrl.u32 %v734_v7, 16  ;;  %v767_v6 = vshrl.u32 %v735_v12, 16 }
  0xce   : > { %v2253_v24 = vcombine.high %v896_v62, %v897_v10  ;;  %v2252_v63 = vcombine.low %v896_v62, %v897_v10  ;;  %v796_v13 = vxor.u32 %v764_v5, %v732_v35  ;;  %v797_v25 = vxor.u32 %v765_v23, %v733_v34 }
  0xcf   : > { %v509_v19 = vadd.s32 %v481_v57, %v3121_v2  ;;  %v510_v21 = vadd.s32 %v481_v57, %v3135_v11  ;;  %v798_v26 = vxor.u32 %v766_v16, %v734_v7  ;;  %v799_v52 = vxor.u32 %v767_v6, %v735_v12 }
  0xd0   : > { %1183 = vmatprep.mubr.bf16.mxu0 %v2253_v24  ;;  %v511_v59 = vadd.s32 %v482_v51, %v3121_v2  ;;  %v512_v18 = vadd.s32 %v482_v51, %v3135_v11  ;;  %v828_v27 = vshrl.u32 %v796_v13, 8  ;;  %v829_v28 = vshrl.u32 %v797_v25, 8 }
  0xd1   : > { %1184 = vmatmul.mubr.bf16.gmra.mxu0 %v2252_v63  ;;  %v544_v22 = vxor.u32 %v3215_v17, %v509_v19  ;;  %v545_v14 = vxor.u32 %v3215_v17, %v510_v21  ;;  %v830_v30 = vshrl.u32 %v798_v26, 8  ;;  %v831_v55 = vshrl.u32 %v799_v52, 8 }
  0xd2   : > { %v546_v32 = vxor.u32 %v3215_v17, %v511_v59  ;;  %v547_v60 = vxor.u32 %v3215_v17, %v512_v18  ;;  %vm860_vm14 = vcmp.ge.s32.totalorder %v828_v27, 1677722  ;;  %vm861_vm15 = vcmp.ge.s32.totalorder %v829_v28, 1677722 }
  0xd3   : > { %v576_v36 = vshrl.u32 %v544_v22, 16  ;;  %v577_v33 = vshrl.u32 %v545_v14, 16  ;;  %vm862_vm0 = vcmp.ge.s32.totalorder %v830_v30, 1677722  ;;  %vm863_vm1 = vcmp.ge.s32.totalorder %v831_v55, 1677722  ;;  %vm882_vm2 = vmpackc.low %vm861_vm15, %vm860_vm14 }
  0xd4   : > { %v578_v8 = vshrl.u32 %v546_v32, 16  ;;  %v579_v56 = vshrl.u32 %v547_v60, 16  ;;  %vm883_vm3 = vmpackc.low %vm863_vm1, %vm862_vm0  ;;  %v898_v39 = vsel %vm882_vm2, %v425_v29, 0  ;;  %v468_v31 = vadd.s32 %v3123_v3, %v3224_v20 }
  0xd5   : > { %v608_v61 = vxor.u32 %v576_v36, %v544_v22  ;;  %v609_v40 = vxor.u32 %v577_v33, %v545_v14  ;;  %v899_v0 = vsel %vm883_vm3, %v426_v15, 0  ;;  %v483_v43 = vmul.u32 256, %v467_v58  ;;  %v427_v36 = vld [vmem:[%s3104_s30 + $0x60] sm:$0xff]  ;;  %v428_v33 = vld [vmem:[%s3104_s30 + $0x68] sm:$0xff] }
  0xd6   : > { %v610_v42 = vxor.u32 %v578_v8, %v546_v32  ;;  %v611_v37 = vxor.u32 %v579_v56, %v547_v60  ;;  %v2255_v44 = vcombine.high %v898_v39, %v899_v0  ;;  %v2254_v9 = vcombine.low %v898_v39, %v899_v0 }
  0xd7   : > { %v640_v38 = vmul.u32 2146121005, %v608_v61  ;;  %v641_v45 = vmul.u32 2146121005, %v609_v40  ;;  %v513_v46 = vadd.s32 %v483_v43, %v3121_v2  ;;  %v514_v47 = vadd.s32 %v483_v43, %v3135_v11 }
  0xd8   : > { %v642_v41 = vmul.u32 2146121005, %v610_v42  ;;  %v643_v48 = vmul.u32 2146121005, %v611_v37  ;;  %1191 = vmatprep.mubr.bf16.mxu0 %v2255_v44 }
  0xd9   : > { %v672_v49 = vshrl.u32 %v640_v38, 15  ;;  %v673_v4 = vshrl.u32 %v641_v45, 15  ;;  %v484_v50 = vmul.u32 256, %v468_v31  ;;  %1192 = vmatmul.mubr.bf16.gmra.mxu0 %v2254_v9  ;;  %v548_v53 = vxor.u32 %v3215_v17, %v513_v46  ;;  %v2619_v9 = vld [vmem:[#allocation9 + $0x30] ss:$8 sps:$4 sm:$0xff]  }
  0xda   : > { %v674_v3 = vshrl.u32 %v642_v41, 15  ;;  %v675_v20 = vshrl.u32 %v643_v48, 15  ;;  %v549_v35 = vxor.u32 %v3215_v17, %v514_v47  ;;  %1357 = vmatpush1.bf16.msra.mxu1 %v2619_v9 }
  0xdb   : > { %v704_v54 = vxor.u32 %v672_v49, %v640_v38  ;;  %v705_v34 = vxor.u32 %v673_v4, %v641_v45  ;;  %v515_v58 = vadd.s32 %v484_v50, %v3121_v2  ;;  %v516_v62 = vadd.s32 %v484_v50, %v3135_v11 }
  0xdc   : > { %v706_v7 = vxor.u32 %v674_v3, %v642_v41  ;;  %v707_v12 = vxor.u32 %v675_v20, %v643_v48  ;;  %v580_v5 = vshrl.u32 %v548_v53, 16  ;;  %v581_v10 = vshrl.u32 %v549_v35, 16 }
  0xdd   : > { %v736_v23 = vmul.u32 2221713035, %v704_v54  ;;  %v737_v57 = vmul.u32 2221713035, %v705_v34  ;;  %v550_v51 = vxor.u32 %v3215_v17, %v515_v58  ;;  %v551_v24 = vxor.u32 %v3215_v17, %v516_v62  ;;  %v2622_v54 = vld [vmem:[#allocation9 + $0x20] ss:$8 sps:$4 sm:$0xff]  }
  0xde   : > { %v738_v63 = vmul.u32 2221713035, %v706_v7  ;;  %v739_v16 = vmul.u32 2221713035, %v707_v12  ;;  %v612_v6 = vxor.u32 %v580_v5, %v548_v53  ;;  %v613_v13 = vxor.u32 %v581_v10, %v549_v35  ;;  %v2620_v35 = vld [vmem:[#allocation9 + $0x24] ss:$8 sps:$4 sm:$0xff]  }
  0xdf   : > { %v768_v25 = vshrl.u32 %v736_v23, 16  ;;  %v769_v19 = vshrl.u32 %v737_v57, 16  ;;  %v582_v21 = vshrl.u32 %v550_v51, 16  ;;  %v583_v2 = vshrl.u32 %v551_v24, 16  ;;  %1358 = vmatprep.subr.bf16.mxu1 %v2620_v35  ;;  %v429_v7 = vld [vmem:[%s3104_s30 + $0x70] sm:$0xff]  ;;  %v430_v12 = vld [vmem:[%s3104_s30 + $0x78] sm:$0xff] }
  0xe0   : > { %v770_v26 = vshrl.u32 %v738_v63, 16  ;;  %v771_v11 = vshrl.u32 %v739_v16, 16  ;;  %v644_v52 = vmul.u32 2146121005, %v612_v6  ;;  %v645_v59 = vmul.u32 2146121005, %v613_v13  ;;  %1359 = vmatpush1.bf16.msra.mxu1 %v2622_v54 }
  0xe1   : > { %v800_v18 = vxor.u32 %v768_v25, %v736_v23  ;;  %v801_v27 = vxor.u32 %v769_v19, %v737_v57  ;;  %v614_v28 = vxor.u32 %v582_v21, %v550_v51  ;;  %v615_v22 = vxor.u32 %v583_v2, %v551_v24  ;;  %v2623_v23 = vld [vmem:[#allocation9 + $0x14] ss:$8 sps:$4 sm:$0xff]   ;;  %v2625_v57 = vld [vmem:[#allocation9 + $0x10] ss:$8 sps:$4 sm:$0xff]   ;;  %v2626_v6 = vld [vmem:[#allocation9 + $0x4] ss:$8 sps:$4 sm:$0xff]  }
  0xe2   : > { %v802_v14 = vxor.u32 %v770_v26, %v738_v63  ;;  %v803_v17 = vxor.u32 %v771_v11, %v739_v16  ;;  %v676_v29 = vshrl.u32 %v644_v52, 15  ;;  %v677_v15 = vshrl.u32 %v645_v59, 15  ;;  %1360 = vmatprep.subr.bf16.mxu1 %v2623_v23  ;;  %v2628_v13 = vld [vmem:[#allocation9] ss:$8 sps:$4 sm:$0xff]   ;;  %v2629_v19 = vld [vmem:[#allocation10 + $0x78] sm:$0xff]   ;;  %v2631_v2 = vld [vmem:[#allocation10 + $0x70] sm:$0xff]  }
  0xe3   : > { %v832_v30 = vshrl.u32 %v800_v18, 8  ;;  %v833_v55 = vshrl.u32 %v801_v27, 8  ;;  %v646_v32 = vmul.u32 2146121005, %v614_v28  ;;  %v647_v60 = vmul.u32 2146121005, %v615_v22  ;;  %2431 = vmatprep.subr.bf16.mxu0 %v2629_v19 }
  0xe4   : > { %v834_v8 = vshrl.u32 %v802_v14, 8  ;;  %v835_v56 = vshrl.u32 %v803_v17, 8  ;;  %v708_v39 = vxor.u32 %v676_v29, %v644_v52  ;;  %v709_v61 = vxor.u32 %v677_v15, %v645_v59  ;;  %1361 = vmatpush1.bf16.msra.mxu1 %v2625_v57  ;;  %v2630_v21 = vld [vmem:[#allocation10 + $0x38] sm:$0xff]   ;;  %v2632_v26 = vld [vmem:[#allocation10 + $0x30] sm:$0xff]   ;;  %v2633_v11 = vld [vmem:[#allocation10 + $0x68] sm:$0xff]   ;;  %s2113_s30 = sshll.u32 %s3453_s12, 4  ;;  %s3507_s30 = int_to_ptr.vmem [resolvable:$true] %s2113_s30 }
  0xe5   : > { %vm864_vm4 = vcmp.ge.s32.totalorder %v832_v30, 1677722  ;;  %vm865_vm5 = vcmp.ge.s32.totalorder %v833_v55, 1677722  ;;  %v678_v40 = vshrl.u32 %v646_v32, 15  ;;  %v679_v31 = vshrl.u32 %v647_v60, 15  ;;  %1362 = vmatprep.subr.bf16.mxu1 %v2626_v6  ;;  %2432 = vmatpush3.bf16.msra.mxu0 %v2630_v21  ;;  %p2808_p6 = scmp.lt.s32.totalorder %s3507_s30, %s2806_s29 }
  0xe6   : > { %vm866_vm6 = vcmp.ge.s32.totalorder %v834_v8, 1677722  ;;  %vm867_vm7 = vcmp.ge.s32.totalorder %v835_v56, 1677722  ;;  %vm884_vm8 = vmpackc.low %vm865_vm5, %vm864_vm4  ;;  %v740_v0 = vmul.u32 2221713035, %v708_v39  ;;  %2433 = vmatprep.subr.bf16.mxu0 %v2631_v2 }
  0xe7   : > { %vm885_vm9 = vmpackc.low %vm867_vm7, %vm866_vm6  ;;  %v900_v42 = vsel %vm884_vm8, %v427_v36, 0  ;;  %v710_v37 = vxor.u32 %v678_v40, %v646_v32  ;;  %v711_v43 = vxor.u32 %v679_v31, %v647_v60  ;;  %v741_v44 = vmul.u32 2221713035, %v709_v61  ;;  %v2634_v52 = vld [vmem:[#allocation10 + $0x28] sm:$0xff]   ;;  %v2635_v59 = vld [vmem:[#allocation10 + $0x60] sm:$0xff]   ;;  %s2801_s19 = scalar_lea.vmem %s3507_s30, 2048 }
  0xe8   : > { %v901_v38 = vsel %vm885_vm9, %v428_v33, 0  ;;  %v772_v45 = vshrl.u32 %v740_v0, 16  ;;  %1363 = vmatpush1.bf16.msra.mxu1 %v2628_v13  ;;  %v2884_v25 = vmov 0   ;;  %v2636_v18 = vld [vmem:[#allocation10 + $0x20] sm:$0xff]   ;;  %v2637_v27 = vld [vmem:[#allocation10 + $0x58] sm:$0xff]   ;;  %v2639_v22 = vld [vmem:[#allocation10 + $0x50] sm:$0xff]   ;;  %p2802_p12 = scmp.ne.s32.totalorder %s3507_s30, %s2801_s19  ;;  %p2809_p4 = scmp.lt.s32.totalorder %s2807_s26, %s2801_s19 }
  0xe9   : > { %v2257_v41 = vcombine.high %v900_v42, %v901_v38  ;;  %v2256_v48 = vcombine.low %v900_v42, %v901_v38  ;;  %v742_v46 = vmul.u32 2221713035, %v710_v37  ;;  %v743_v47 = vmul.u32 2221713035, %v711_v43  ;;  %1380 = vmatprep.mubr.bf16.mxu1 %v2884_v25  ;;  %2434 = vmatpush3.bf16.msra.mxu0 %v2632_v26  ;;  %v2638_v28 = vld [vmem:[#allocation10 + $0x18] sm:$0xff]   ;;  %v2640_v14 = vld [vmem:[#allocation10 + $0x10] sm:$0xff]  }
  0xea   : > { %v773_v49 = vshrl.u32 %v741_v44, 16  ;;  %v804_v4 = vxor.u32 %v772_v45, %v740_v0  ;;  %2435 = vmatprep.subr.bf16.mxu0 %v2633_v11  ;;  %v2641_v17 = vld [vmem:[#allocation10 + $0x48] sm:$0xff]   ;;  %v3339_v32 = vld [vmem:[%s3554_s3] ss:$0 sm:$0xff]  ;;  %p2803_p9 = pnand %p2802_p12, %p3591_p1  ;;  %p2810_p0 = por %p2809_p4, %p2808_p6 }
  0xeb   : > { %1199 = vmatprep.mubr.bf16.mxu0 %v2257_v41  ;;  %v774_v50 = vshrl.u32 %v742_v46, 16  ;;  %v775_v3 = vshrl.u32 %v743_v47, 16  ;;  %v2642_v29 = vld [vmem:[#allocation10 + $0x8] sm:$0xff]  }
  0xec   : > { %1200 = vmatmul.mubr.bf16.gmra.mxu0 %v2256_v48  ;;  %v805_v20 = vxor.u32 %v773_v49, %v741_v44  ;;  %v836_v53 = vshrl.u32 %v804_v4, 8  ;;  %p2804_p13 = pneg %p2803_p9 }
  0xed   : > { %v806_v34 = vxor.u32 %v774_v50, %v742_v46  ;;  %v807_v58 = vxor.u32 %v775_v3, %v743_v47  ;;  %2436 = vmatpush3.bf16.msra.mxu0 %v2634_v52 }
  0xee   : > { %v837_v62 = vshrl.u32 %v805_v20, 8  ;;  %vm868_vm10 = vcmp.ge.s32.totalorder %v836_v53, 1677722  ;;  %2437 = vmatprep.subr.bf16.mxu0 %v2635_v59  ;;  %p2811_p3 = pnand %p2810_p0, %p2804_p13 }
  0xef   : > { %v838_v5 = vshrl.u32 %v806_v34, 8  ;;  %v839_v10 = vshrl.u32 %v807_v58, 8 }
  0xf0   : > { %vm869_vm11 = vcmp.ge.s32.totalorder %v837_v62, 1677722 }
  0xf1   : > { %vm870_vm12 = vcmp.ge.s32.totalorder %v838_v5, 1677722  ;;  %vm871_vm13 = vcmp.ge.s32.totalorder %v839_v10, 1677722  ;;  %vm886_vm14 = vmpackc.low %vm869_vm11, %vm868_vm10  ;;  %2438 = vmatpush3.bf16.msra.mxu0 %v2636_v18 }
  0xf2   : > { %vm887_vm15 = vmpackc.low %vm871_vm13, %vm870_vm12  ;;  %v902_v51 = vsel %vm886_vm14, %v429_v7, 0  ;;  %2439 = vmatprep.subr.bf16.mxu0 %v2637_v27 }
  0xf3   : > { %v903_v24 = vsel %vm887_vm15, %v430_v12, 0 }
  0xf4   : > { %v2259_v63 = vcombine.high %v902_v51, %v903_v24  ;;  %v2258_v16 = vcombine.low %v902_v51, %v903_v24 }
  0xf5   : > { %2440 = vmatpush3.bf16.msra.mxu0 %v2638_v28 }
  0xf6   : > { %1207 = vmatprep.mubr.bf16.mxu0 %v2259_v63  ;;  %2441 = vmatprep.subr.bf16.mxu0 %v2639_v22 }
  0xf7   : > { %1208 = vmatmul.mubr.bf16.gmra.mxu0 %v2258_v16 }
  0xf9   : > { %2442 = vmatpush3.bf16.msra.mxu0 %v2640_v14 }
  0xfa   : > { %2443 = vmatprep.subr.bf16.mxu0 %v2641_v17 }
  0xfd   : > { %2444 = vmatpush3.bf16.msra.mxu0 %v2642_v29 }
 0x164   : > { %v2383_v15 = vpop.f32.mrf.mxu0 }
 0x166   : > { %v2384_v30 = vpop.f32.mrf.mxu0 }
 0x167   : > { %v2385_v55 = vadd.f32 %v2384_v30, %v2383_v15 }
 0x168   : > { %v2386_v60 = vpop.f32.mrf.mxu0 }
 0x169   : > { %v1154_v33 = vadd.f32 %v2385_v55, %v3339_v32 }
 0x16a   : > { %v2387_v36 = vpop.f32.mrf.mxu0 }
 0x16b   : > { %v2388_v8 = vadd.f32 %v2387_v36, %v2386_v60  ;;  %v1216_v40 = vmax.f32 %v1154_v33, 0.0 }
 0x16c   : > { %v2389_v56 = vpop.f32.mrf.mxu0 }
 0x16d   : > { %v1157_v39 = vadd.f32 %v2388_v8, %v3339_v32 }
 0x16e   : > { %v2390_v61 = vpop.f32.mrf.mxu0 }
 0x16f   : > { %v1217_v31 = vmax.f32 %v1157_v39, 0.0  ;;  %v2391_v0 = vadd.f32 %v2390_v61, %v2389_v56 }
 0x170   : > { %v2392_v42 = vpop.f32.mrf.mxu0 }
 0x171   : > { %v1232_v37 = vpack.c.bf16 %v1217_v31, %v1216_v40  ;;  %v1162_v44 = vadd.f32 %v2391_v0, %v3339_v32 }
 0x172   : > { %v2393_v43 = vpop.f32.mrf.mxu0 }
 0x173   : > { %v2394_v9 = vadd.f32 %v2393_v43, %v2392_v42  ;;  %1381 = vmatmul.mubr.bf16.vlgmr.msra.gmra.mxu1 %v1232_v37  ;;  %v1218_v45 = vmax.f32 %v1162_v44, 0.0 }
 0x174   : > { %1390 = vmatprep.mubr.bf16.mxu1 %v2884_v25 }
 0x175   : > { %v1165_v38 = vadd.f32 %v2394_v9, %v3339_v32 }
 0x177   : > { %v1219_v41 = vmax.f32 %v1165_v38, 0.0 }
 0x179   : > { %v1233_v48 = vpack.c.bf16 %v1219_v41, %v1218_v45 }
 0x17b   : > { %v2395_v46 = vpop.f32.mrf.mxu0  ;;  %1391 = vmatmul.mubr.bf16.gmra.mxu1 %v1233_v48  ;;  %v2643_v48 = vld [vmem:[#allocation10 + $0x40] sm:$0xff]  }
 0x17c   : > { %1400 = vmatprep.mubr.bf16.mxu1 %v2884_v25  ;;  %2445 = vmatprep.subr.bf16.mxu0 %v2643_v48 }
 0x17d   : > { %v2396_v47 = vpop.f32.mrf.mxu0 }
 0x17e   : > { %v2397_v49 = vadd.f32 %v2396_v47, %v2395_v46 }
 0x17f   : > { %v2398_v4 = vpop.f32.mrf.mxu0 }
 0x180   : > { %v1170_v3 = vadd.f32 %v2397_v49, %v3339_v32  ;;  %v2644_v49 = vld [vmem:[#allocation10] sm:$0xff]  }
 0x181   : > { %v2399_v50 = vpop.f32.mrf.mxu0  ;;  %2446 = vmatpush3.bf16.msra.mxu0 %v2644_v49 }
 0x182   : > { %v2400_v20 = vadd.f32 %v2399_v50, %v2398_v4  ;;  %v1220_v34 = vmax.f32 %v1170_v3, 0.0 }
 0x183   : > { %v2401_v53 = vpop.f32.mrf.mxu0 }
 0x184   : > { %v1173_v35 = vadd.f32 %v2400_v20, %v3339_v32 }
 0x185   : > { %v2402_v54 = vpop.f32.mrf.mxu0 }
 0x186   : > { %v1221_v58 = vmax.f32 %v1173_v35, 0.0  ;;  %v2403_v62 = vadd.f32 %v2402_v54, %v2401_v53  ;;  %v2645_v53 = vld [vmem:[#allocation12 + $0x70] ss:$8 sps:$4 sm:$0xff]   ;;  %v2647_v35 = vld [vmem:[#allocation12 + $0x74] ss:$8 sps:$4 sm:$0xff]  }
 0x187   : > { %v2404_v7 = vpop.f32.mrf.mxu0  ;;  %v2650_v54 = vld [vmem:[#allocation12 + $0x64] ss:$8 sps:$4 sm:$0xff]   ;;  %1873 = vmatprep.subr.bf16.mxu1 %v2647_v35 }
 0x188   : > { %v1234_v12 = vpack.c.bf16 %v1221_v58, %v1220_v34  ;;  %v1178_v10 = vadd.f32 %v2403_v62, %v3339_v32  ;;  %1874 = vmatpush1.bf16.msra.mxu1 %v2645_v53  ;;  %v2648_v34 = vld [vmem:[#allocation12 + $0x60] ss:$8 sps:$4 sm:$0xff]   ;;  %v2653_v58 = vld [vmem:[#allocation12 + $0x54] ss:$8 sps:$4 sm:$0xff]   ;;  %v2651_v62 = vld [vmem:[#allocation12 + $0x50] ss:$8 sps:$4 sm:$0xff]  }
 0x189   : > { %v2405_v5 = vpop.f32.mrf.mxu0  ;;  %1875 = vmatprep.subr.bf16.mxu1 %v2650_v54 }
 0x18a   : > { %v2406_v23 = vadd.f32 %v2405_v5, %v2404_v7  ;;  %1401 = vmatmul.mubr.bf16.gmra.mxu1 %v1234_v12  ;;  %v1222_v51 = vmax.f32 %v1178_v10, 0.0  ;;  %v2656_v7 = vld [vmem:[#allocation12 + $0x44] ss:$8 sps:$4 sm:$0xff]   ;;  %v2659_v12 = vld [vmem:[#allocation12 + $0x34] ss:$8 sps:$4 sm:$0xff]  }
 0x18b   : > { %1410 = vmatprep.mubr.bf16.mxu1 %v2884_v25  ;;  %v2657_v5 = vld [vmem:[#allocation12 + $0x30] ss:$8 sps:$4 sm:$0xff]   ;;  %v2662_v10 = vld [vmem:[#allocation12 + $0x24] ss:$8 sps:$4 sm:$0xff]  }
 0x18c   : > { %v1181_v57 = vadd.f32 %v2406_v23, %v3339_v32  ;;  %1876 = vmatpush1.bf16.msra.mxu1 %v2648_v34  ;;  %v2660_v23 = vld [vmem:[#allocation12 + $0x20] ss:$8 sps:$4 sm:$0xff]  }
 0x18d   : > { %1877 = vmatprep.subr.bf16.mxu1 %v2653_v58 }
 0x18e   : > { %v1223_v24 = vmax.f32 %v1181_v57, 0.0  ;;  %v2665_v57 = vld [vmem:[#allocation12 + $0x14] ss:$8 sps:$4 sm:$0xff]  }
 0x190   : > { %v1235_v63 = vpack.c.bf16 %v1223_v24, %v1222_v51  ;;  %1878 = vmatpush1.bf16.msra.mxu1 %v2651_v62  ;;  %v2663_v51 = vld [vmem:[#allocation12 + $0x10] ss:$8 sps:$4 sm:$0xff]   ;;  %v1264_v24 = vsub.s32 1, %v3119_v1 }
 0x191   : > { %v2407_v16 = vpop.f32.mrf.mxu0  ;;  %1879 = vmatprep.subr.bf16.mxu1 %v2656_v7 }
 0x192   : > { %1411 = vmatmul.mubr.bf16.gmra.mxu1 %v1235_v63  ;;  %v1260_v63 = vsub.s32 0, %v3119_v1 }
 0x193   : > { %v2408_v6 = vpop.f32.mrf.mxu0  ;;  %1420 = vmatprep.mubr.bf16.mxu1 %v2884_v25 }
 0x194   : > { %v2409_v13 = vadd.f32 %v2408_v6, %v2407_v16  ;;  %v1256_v16 = vld [vmem:[%s3556_s5] sm:$0x3] }
 0x195   : > { %v2410_v19 = vpop.f32.mrf.mxu0 }
 0x196   : > { %v1186_v2 = vadd.f32 %v2409_v13, %v3339_v32  ;;  %v3372_v13 = vrot.slane %v1256_v16, %v1264_v24 }
 0x197   : > { %v2411_v21 = vpop.f32.mrf.mxu0 }
 0x198   : > { %v2412_v26 = vadd.f32 %v2411_v21, %v2410_v19  ;;  %v1224_v59 = vmax.f32 %v1186_v2, 0.0  ;;  %v3376_v19 = vrot.slane %v1256_v16, %v1260_v63 }
 0x199   : > { %v2413_v52 = vpop.f32.mrf.mxu0 }
 0x19a   : > { %v1189_v11 = vadd.f32 %v2412_v26, %v3339_v32 }
 0x19b   : > { %v2414_v27 = vpop.f32.mrf.mxu0 }
 0x19c   : > { %v1225_v18 = vmax.f32 %v1189_v11, 0.0  ;;  %v2415_v28 = vadd.f32 %v2414_v27, %v2413_v52 }
 0x19d   : > { %v2416_v22 = vpop.f32.mrf.mxu0 }
 0x19e   : > { %v1236_v14 = vpack.c.bf16 %v1225_v18, %v1224_v59  ;;  %v1194_v29 = vadd.f32 %v2415_v28, %v3339_v32 }
 0x19f   : > { %v2417_v17 = vpop.f32.mrf.mxu0 }
 0x1a0   : > { %1421 = vmatmul.mubr.bf16.gmra.mxu1 %v1236_v14  ;;  %v2418_v15 = vadd.f32 %v2417_v17, %v2416_v22  ;;  %v1226_v55 = vmax.f32 %v1194_v29, 0.0 }
 0x1a1   : > { %1430 = vmatprep.mubr.bf16.mxu1 %v2884_v25 }
 0x1a2   : > { %v1197_v30 = vadd.f32 %v2418_v15, %v3339_v32 }
 0x1a4   : > { %v1227_v60 = vmax.f32 %v1197_v30, 0.0 }
 0x1a6   : > { %v1237_v36 = vpack.c.bf16 %v1227_v60, %v1226_v55 }
 0x1a8   : > { %1431 = vmatmul.mubr.bf16.gmra.mxu1 %v1237_v36 }
 0x1a9   : > { %1440 = vmatprep.mubr.bf16.mxu1 %v2884_v25 }
 0x1ac   : > { %v2419_v33 = vpop.f32.mrf.mxu0 }
 0x1ae   : > { %v2420_v8 = vpop.f32.mrf.mxu0 }
 0x1af   : > { %v2421_v56 = vadd.f32 %v2420_v8, %v2419_v33 }
 0x1b0   : > { %v2422_v39 = vpop.f32.mrf.mxu0 }
 0x1b1   : > { %v1202_v40 = vadd.f32 %v2421_v56, %v3339_v32 }
 0x1b2   : > { %v2423_v61 = vpop.f32.mrf.mxu0 }
 0x1b3   : > { %v2424_v31 = vadd.f32 %v2423_v61, %v2422_v39  ;;  %v1228_v42 = vmax.f32 %v1202_v40, 0.0 }
 0x1b5   : > { %v1205_v0 = vadd.f32 %v2424_v31, %v3339_v32 }
 0x1b7   : > { %v1229_v37 = vmax.f32 %v1205_v0, 0.0  ;;  %v2425_v43 = vpop.f32.mrf.mxu0 }
 0x1b9   : > { %v2426_v44 = vpop.f32.mrf.mxu0  ;;  %v1238_v9 = vpack.c.bf16 %v1229_v37, %v1228_v42 }
 0x1ba   : > { %v2427_v38 = vadd.f32 %v2426_v44, %v2425_v43 }
 0x1bb   : > { %v2428_v45 = vpop.f32.mrf.mxu0  ;;  %1441 = vmatmul.mubr.bf16.gmra.mxu1 %v1238_v9 }
 0x1bc   : > { %1450 = vmatprep.mubr.bf16.mxu1 %v2884_v25  ;;  %v1210_v46 = vadd.f32 %v2427_v38, %v3339_v32 }
 0x1bd   : > { %v2429_v41 = vpop.f32.mrf.mxu0 }
 0x1be   : > { %v2430_v47 = vadd.f32 %v2429_v41, %v2428_v45  ;;  %v1230_v50 = vmax.f32 %v1210_v46, 0.0 }
 0x1c0   : > { %v1213_v4 = vadd.f32 %v2430_v47, %v3339_v32  ;;  %v2654_v32 = vld [vmem:[#allocation12 + $0x40] ss:$8 sps:$4 sm:$0xff]  }
 0x1c1   : > { %1880 = vmatpush1.bf16.msra.mxu1 %v2654_v32 }
 0x1c2   : > { %v1231_v3 = vmax.f32 %v1213_v4, 0.0  ;;  %1881 = vmatprep.subr.bf16.mxu1 %v2659_v12 }
 0x1c4   : > { %v1239_v20 = vpack.c.bf16 %v1231_v3, %v1230_v50 }
 0x1c5   : > { %1882 = vmatpush1.bf16.msra.mxu1 %v2657_v5 }
 0x1c6   : > { %1451 = vmatmul.mubr.bf16.gmra.mxu1 %v1239_v20  ;;  %1883 = vmatprep.subr.bf16.mxu1 %v2662_v10 }
 0x1c7   : > { %1905 = vmatprep.mubr.bf16.mxu1 %v2884_v25 }
 0x1c9   : > { %1884 = vmatpush1.bf16.msra.mxu1 %v2660_v23 }
 0x1ca   : > { %1885 = vmatprep.subr.bf16.mxu1 %v2665_v57 }
 0x1cd   : > { %1886 = vmatpush1.bf16.msra.mxu1 %v2663_v51 }
 0x233   : > { %v1382_v6 = vpop.f32.mrf.mxu1 }
 0x234   : > { %v1383_v52 = vadd.f32 %v1382_v6, %v3376_v19 }
 0x235   : > { %v1384_v21 = vpop.f32.mrf.mxu1 }
 0x236   : > { %v1385_v26 = vadd.f32 %v1384_v21, %v3372_v13  ;;  %v1461_v17 = vmax.f32 %v1383_v52, 0.0 }
 0x237   : > { %v1386_v2 = vpop.f32.mrf.mxu1 }
 0x238   : > { %v1387_v11 = vadd.f32 %v1386_v2, %v3376_v19  ;;  %v1462_v22 = vmax.f32 %v1385_v26, 0.0 }
 0x239   : > { %v1388_v59 = vpop.f32.mrf.mxu1 }
 0x23a   : > { %v1389_v18 = vadd.f32 %v1388_v59, %v3372_v13  ;;  %v1463_v27 = vmax.f32 %v1387_v11, 0.0 }
 0x23b   : > { %v1392_v28 = vpop.f32.mrf.mxu1 }
 0x23c   : > { %v1464_v14 = vmax.f32 %v1389_v18, 0.0  ;;  %v1493_v30 = vpack.c.bf16 %v1463_v27, %v1461_v17  ;;  %v1393_v33 = vadd.f32 %v1392_v28, %v3376_v19 }
 0x23d   : > { %v1394_v29 = vpop.f32.mrf.mxu1 }
 0x23e   : > { %v1494_v15 = vpack.c.bf16 %v1464_v14, %v1462_v22  ;;  %v1395_v60 = vadd.f32 %v1394_v29, %v3372_v13  ;;  %v1465_v31 = vmax.f32 %v1393_v33, 0.0 }
 0x23f   : > { %v1396_v55 = vpop.f32.mrf.mxu1 }
 0x240   : > { %v1397_v36 = vadd.f32 %v1396_v55, %v3376_v19  ;;  %1676 = vmatprep.mubr.bf16.mxu0 %v1494_v15  ;;  %v1466_v61 = vmax.f32 %v1395_v60, 0.0 }
 0x241   : > { %v1398_v8 = vpop.f32.mrf.mxu1  ;;  %1677 = vmatmul.mubr.bf16.vlgmr.msra.gmra.mxu0 %v1493_v30 }
 0x242   : > { %v1399_v56 = vadd.f32 %v1398_v8, %v3372_v13  ;;  %v1467_v39 = vmax.f32 %v1397_v36, 0.0 }
 0x244   : > { %v1468_v40 = vmax.f32 %v1399_v56, 0.0  ;;  %v1495_v42 = vpack.c.bf16 %v1467_v39, %v1465_v31 }
 0x246   : > { %v1496_v0 = vpack.c.bf16 %v1468_v40, %v1466_v61 }
 0x248   : > { %1684 = vmatprep.mubr.bf16.mxu0 %v1496_v0 }
 0x249   : > { %1685 = vmatmul.mubr.bf16.gmra.mxu0 %v1495_v42 }
 0x24a   : > { %v1402_v37 = vpop.f32.mrf.mxu1 }
 0x24b   : > { %v1403_v45 = vadd.f32 %v1402_v37, %v3376_v19 }
 0x24c   : > { %v1404_v43 = vpop.f32.mrf.mxu1 }
 0x24d   : > { %v1405_v9 = vadd.f32 %v1404_v43, %v3372_v13  ;;  %v1469_v50 = vmax.f32 %v1403_v45, 0.0 }
 0x24e   : > { %v1406_v44 = vpop.f32.mrf.mxu1 }
 0x24f   : > { %v1407_v38 = vadd.f32 %v1406_v44, %v3376_v19  ;;  %v1470_v49 = vmax.f32 %v1405_v9, 0.0 }
 0x250   : > { %v1408_v41 = vpop.f32.mrf.mxu1 }
 0x251   : > { %v1409_v48 = vadd.f32 %v1408_v41, %v3372_v13  ;;  %v1471_v46 = vmax.f32 %v1407_v38, 0.0 }
 0x252   : > { %v1412_v47 = vpop.f32.mrf.mxu1 }
 0x253   : > { %v1472_v4 = vmax.f32 %v1409_v48, 0.0  ;;  %v1497_v53 = vpack.c.bf16 %v1471_v46, %v1469_v50  ;;  %v1413_v58 = vadd.f32 %v1412_v47, %v3376_v19 }
 0x254   : > { %v1414_v3 = vpop.f32.mrf.mxu1 }
 0x255   : > { %v1498_v20 = vpack.c.bf16 %v1472_v4, %v1470_v49  ;;  %v1415_v54 = vadd.f32 %v1414_v3, %v3372_v13  ;;  %v1473_v10 = vmax.f32 %v1413_v58, 0.0 }
 0x256   : > { %v1416_v35 = vpop.f32.mrf.mxu1 }
 0x257   : > { %v1417_v34 = vadd.f32 %v1416_v35, %v3376_v19  ;;  %1692 = vmatprep.mubr.bf16.mxu0 %v1498_v20  ;;  %v1474_v12 = vmax.f32 %v1415_v54, 0.0 }
 0x258   : > { %v1418_v62 = vpop.f32.mrf.mxu1  ;;  %1693 = vmatmul.mubr.bf16.gmra.mxu0 %v1497_v53 }
 0x259   : > { %v1419_v7 = vadd.f32 %v1418_v62, %v3372_v13  ;;  %v1475_v32 = vmax.f32 %v1417_v34, 0.0 }
 0x25b   : > { %v1476_v5 = vmax.f32 %v1419_v7, 0.0  ;;  %v1499_v57 = vpack.c.bf16 %v1475_v32, %v1473_v10 }
 0x25d   : > { %v1500_v23 = vpack.c.bf16 %v1476_v5, %v1474_v12  ;;  %v2666_v12 = vld [vmem:[#allocation12] ss:$8 sps:$4 sm:$0xff]   ;;  %v2668_v5 = vld [vmem:[#allocation12 + $0x4] ss:$8 sps:$4 sm:$0xff]  }
 0x25e   : > { %1887 = vmatprep.subr.bf16.mxu1 %v2668_v5 }
 0x25f   : > { %1700 = vmatprep.mubr.bf16.mxu0 %v1500_v23  ;;  %1888 = vmatpush1.bf16.msra.mxu1 %v2666_v12 }
 0x260   : > { %v1422_v51 = vpop.f32.mrf.mxu1  ;;  %1701 = vmatmul.mubr.bf16.gmra.mxu0 %v1499_v57 }
 0x261   : > { %v1423_v26 = vadd.f32 %v1422_v51, %v3376_v19 }
 0x262   : > { %v1424_v16 = vpop.f32.mrf.mxu1 }
 0x263   : > { %v1425_v21 = vadd.f32 %v1424_v16, %v3372_v13  ;;  %v1477_v22 = vmax.f32 %v1423_v26, 0.0 }
 0x264   : > { %v1426_v6 = vpop.f32.mrf.mxu1 }
 0x265   : > { %v1427_v2 = vadd.f32 %v1426_v6, %v3376_v19  ;;  %v1478_v18 = vmax.f32 %v1425_v21, 0.0 }
 0x266   : > { %v1428_v11 = vpop.f32.mrf.mxu1 }
 0x267   : > { %v1429_v52 = vadd.f32 %v1428_v11, %v3372_v13  ;;  %v1479_v59 = vmax.f32 %v1427_v2, 0.0 }
 0x268   : > { %v1432_v28 = vpop.f32.mrf.mxu1 }
 0x269   : > { %v1480_v27 = vmax.f32 %v1429_v52, 0.0  ;;  %v1501_v29 = vpack.c.bf16 %v1479_v59, %v1477_v22  ;;  %v1433_v60 = vadd.f32 %v1432_v28, %v3376_v19 }
 0x26a   : > { %v1434_v17 = vpop.f32.mrf.mxu1 }
 0x26b   : > { %v1502_v14 = vpack.c.bf16 %v1480_v27, %v1478_v18  ;;  %v1435_v30 = vadd.f32 %v1434_v17, %v3372_v13  ;;  %v1481_v61 = vmax.f32 %v1433_v60, 0.0 }
 0x26c   : > { %v1436_v15 = vpop.f32.mrf.mxu1 }
 0x26d   : > { %1708 = vmatprep.mubr.bf16.mxu0 %v1502_v14  ;;  %v1437_v55 = vadd.f32 %v1436_v15, %v3376_v19  ;;  %v1482_v56 = vmax.f32 %v1435_v30, 0.0 }
 0x26e   : > { %1709 = vmatmul.mubr.bf16.gmra.mxu0 %v1501_v29  ;;  %v1438_v36 = vpop.f32.mrf.mxu1 }
 0x26f   : > { %v1439_v33 = vadd.f32 %v1438_v36, %v3372_v13  ;;  %v1483_v8 = vmax.f32 %v1437_v55, 0.0 }
 0x271   : > { %v1484_v39 = vmax.f32 %v1439_v33, 0.0  ;;  %v1503_v31 = vpack.c.bf16 %v1483_v8, %v1481_v61 }
 0x273   : > { %v1504_v40 = vpack.c.bf16 %v1484_v39, %v1482_v56 }
 0x275   : > { %1716 = vmatprep.mubr.bf16.mxu0 %v1504_v40 }
 0x276   : > { %1717 = vmatmul.mubr.bf16.gmra.mxu0 %v1503_v31 }
 0x27b   : > { %v1442_v0 = vpop.f32.mrf.mxu1 }
 0x27c   : > { %v1443_v9 = vadd.f32 %v1442_v0, %v3376_v19 }
 0x27d   : > { %v1444_v42 = vpop.f32.mrf.mxu1 }
 0x27e   : > { %v1445_v43 = vadd.f32 %v1444_v42, %v3372_v13  ;;  %v1485_v47 = vmax.f32 %v1443_v9, 0.0 }
 0x27f   : > { %v1446_v37 = vpop.f32.mrf.mxu1 }
 0x280   : > { %v1447_v44 = vadd.f32 %v1446_v37, %v3376_v19  ;;  %v1486_v48 = vmax.f32 %v1445_v43, 0.0 }
 0x281   : > { %v1448_v38 = vpop.f32.mrf.mxu1 }
 0x282   : > { %v1449_v45 = vadd.f32 %v1448_v38, %v3372_v13  ;;  %v1487_v41 = vmax.f32 %v1447_v44, 0.0 }
 0x284   : > { %v1488_v46 = vmax.f32 %v1449_v45, 0.0  ;;  %v1505_v50 = vpack.c.bf16 %v1487_v41, %v1485_v47 }
 0x286   : > { %v1506_v49 = vpack.c.bf16 %v1488_v46, %v1486_v48  ;;  %v1452_v4 = vpop.f32.mrf.mxu1 }
 0x287   : > { %v1453_v54 = vadd.f32 %v1452_v4, %v3376_v19 }
 0x288   : > { %v1454_v3 = vpop.f32.mrf.mxu1  ;;  %1724 = vmatprep.mubr.bf16.mxu0 %v1506_v49 }
 0x289   : > { %1725 = vmatmul.mubr.bf16.gmra.mxu0 %v1505_v50  ;;  %v1455_v53 = vadd.f32 %v1454_v3, %v3372_v13  ;;  %v1489_v10 = vmax.f32 %v1453_v54, 0.0 }
 0x28a   : > { %v1456_v20 = vpop.f32.mrf.mxu1 }
 0x28b   : > { %v1457_v35 = vadd.f32 %v1456_v20, %v3376_v19  ;;  %v1490_v7 = vmax.f32 %v1455_v53, 0.0  ;;  %v3413_v19 = vld [vmem:[%s3558_s7] ss:$0 sm:$0xff] }
 0x28c   : > { %v1458_v34 = vpop.f32.mrf.mxu1 }
 0x28d   : > { %v1459_v58 = vadd.f32 %v1458_v34, %v3372_v13  ;;  %v1491_v62 = vmax.f32 %v1457_v35, 0.0 }
 0x28f   : > { %v1492_v32 = vmax.f32 %v1459_v58, 0.0  ;;  %v1507_v57 = vpack.c.bf16 %v1491_v62, %v1489_v10 }
 0x291   : > { %v1508_v23 = vpack.c.bf16 %v1492_v32, %v1490_v7 }
 0x293   : > { %1732 = vmatprep.mubr.bf16.mxu0 %v1508_v23 }
 0x294   : > { %1733 = vmatmul.mubr.bf16.gmra.mxu0 %v1507_v57 }
 0x301   : > { %v2447_v51 = vpop.f32.mrf.mxu0 }
 0x303   : > { %v2448_v16 = vpop.f32.mrf.mxu0 }
 0x304   : > { %v2449_v6 = vadd.f32 %v2448_v16, %v2447_v51 }
 0x305   : > { %v2450_v13 = vpop.f32.mrf.mxu0 }
 0x306   : > { %v1679_v2 = vadd.f32 %v2449_v6, %v3413_v19 }
 0x307   : > { %v2451_v21 = vpop.f32.mrf.mxu0 }
 0x308   : > { %v2452_v26 = vadd.f32 %v2451_v21, %v2450_v13  ;;  %v1741_v18 = vmax.f32 %v1679_v2, 0.0 }
 0x309   : > { %v2453_v11 = vpop.f32.mrf.mxu0 }
 0x30a   : > { %v1682_v52 = vadd.f32 %v2452_v26, %v3413_v19 }
 0x30b   : > { %v2454_v59 = vpop.f32.mrf.mxu0 }
 0x30c   : > { %v1742_v27 = vmax.f32 %v1682_v52, 0.0  ;;  %v2455_v28 = vadd.f32 %v2454_v59, %v2453_v11 }
 0x30d   : > { %v2456_v22 = vpop.f32.mrf.mxu0 }
 0x30e   : > { %v1757_v14 = vpack.c.bf16 %v1742_v27, %v1741_v18  ;;  %v1687_v29 = vadd.f32 %v2455_v28, %v3413_v19 }
 0x30f   : > { %v2457_v17 = vpop.f32.mrf.mxu0 }
 0x310   : > { %v2458_v15 = vadd.f32 %v2457_v17, %v2456_v22  ;;  %1906 = vmatmul.mubr.bf16.vlgmr.msra.gmra.mxu1 %v1757_v14  ;;  %v1743_v55 = vmax.f32 %v1687_v29, 0.0 }
 0x311   : > { %1915 = vmatprep.mubr.bf16.mxu1 %v2884_v25 }
 0x312   : > { %v1690_v30 = vadd.f32 %v2458_v15, %v3413_v19 }
 0x314   : > { %v1744_v60 = vmax.f32 %v1690_v30, 0.0 }
 0x316   : > { %v1758_v36 = vpack.c.bf16 %v1744_v60, %v1743_v55 }
 0x318   : > { %v2459_v33 = vpop.f32.mrf.mxu0  ;;  %1916 = vmatmul.mubr.bf16.gmra.mxu1 %v1758_v36 }
 0x319   : > { %1925 = vmatprep.mubr.bf16.mxu1 %v2884_v25 }
 0x31a   : > { %v2460_v8 = vpop.f32.mrf.mxu0 }
 0x31b   : > { %v2461_v56 = vadd.f32 %v2460_v8, %v2459_v33 }
 0x31c   : > { %v2462_v39 = vpop.f32.mrf.mxu0 }
 0x31d   : > { %v1695_v40 = vadd.f32 %v2461_v56, %v3413_v19 }
 0x31e   : > { %v2463_v61 = vpop.f32.mrf.mxu0 }
 0x31f   : > { %v2464_v31 = vadd.f32 %v2463_v61, %v2462_v39  ;;  %v1745_v43 = vmax.f32 %v1695_v40, 0.0 }
 0x320   : > { %v2465_v0 = vpop.f32.mrf.mxu0 }
 0x321   : > { %v1698_v42 = vadd.f32 %v2464_v31, %v3413_v19 }
 0x322   : > { %v2466_v37 = vpop.f32.mrf.mxu0 }
 0x323   : > { %v1746_v44 = vmax.f32 %v1698_v42, 0.0  ;;  %v2467_v9 = vadd.f32 %v2466_v37, %v2465_v0  ;;  %v1781_v0 = vld [vmem:[%s3560_s9] sm:$0x3] }
 0x324   : > { %v2468_v38 = vpop.f32.mrf.mxu0  ;;  %v3443_v42 = vrot.slane %v1781_v0, %v1260_v63 }
 0x325   : > { %v1759_v45 = vpack.c.bf16 %v1746_v44, %v1745_v43  ;;  %v1703_v48 = vadd.f32 %v2467_v9, %v3413_v19 }
 0x326   : > { %v2469_v41 = vpop.f32.mrf.mxu0 }
 0x327   : > { %v2470_v46 = vadd.f32 %v2469_v41, %v2468_v38  ;;  %1926 = vmatmul.mubr.bf16.gmra.mxu1 %v1759_v45  ;;  %v1747_v49 = vmax.f32 %v1703_v48, 0.0 }
 0x328   : > { %1935 = vmatprep.mubr.bf16.mxu1 %v2884_v25 }
 0x329   : > { %v1706_v47 = vadd.f32 %v2470_v46, %v3413_v19 }
 0x32b   : > { %v1748_v4 = vmax.f32 %v1706_v47, 0.0 }
 0x32d   : > { %v1760_v50 = vpack.c.bf16 %v1748_v4, %v1747_v49 }
 0x32e   : > { %v2471_v3 = vpop.f32.mrf.mxu0 }
 0x32f   : > { %1936 = vmatmul.mubr.bf16.gmra.mxu1 %v1760_v50 }
 0x330   : > { %v2472_v20 = vpop.f32.mrf.mxu0  ;;  %1945 = vmatprep.mubr.bf16.mxu1 %v2884_v25 }
 0x331   : > { %v2473_v53 = vadd.f32 %v2472_v20, %v2471_v3 }
 0x332   : > { %v2474_v35 = vpop.f32.mrf.mxu0 }
 0x333   : > { %v1711_v34 = vadd.f32 %v2473_v53, %v3413_v19 }
 0x334   : > { %v2475_v54 = vpop.f32.mrf.mxu0 }
 0x335   : > { %v2476_v58 = vadd.f32 %v2475_v54, %v2474_v35  ;;  %v1749_v32 = vmax.f32 %v1711_v34, 0.0 }
 0x336   : > { %v2477_v7 = vpop.f32.mrf.mxu0 }
 0x337   : > { %v1714_v62 = vadd.f32 %v2476_v58, %v3413_v19 }
 0x338   : > { %v2478_v5 = vpop.f32.mrf.mxu0 }
 0x339   : > { %v1750_v12 = vmax.f32 %v1714_v62, 0.0  ;;  %v2479_v10 = vadd.f32 %v2478_v5, %v2477_v7 }
 0x33a   : > { %v2480_v23 = vpop.f32.mrf.mxu0 }
 0x33b   : > { %v1761_v57 = vpack.c.bf16 %v1750_v12, %v1749_v32  ;;  %v1719_v16 = vadd.f32 %v2479_v10, %v3413_v19 }
 0x33c   : > { %v2481_v51 = vpop.f32.mrf.mxu0 }
 0x33d   : > { %1946 = vmatmul.mubr.bf16.gmra.mxu1 %v1761_v57  ;;  %v2482_v6 = vadd.f32 %v2481_v51, %v2480_v23  ;;  %v1751_v21 = vmax.f32 %v1719_v16, 0.0 }
 0x33e   : > { %1955 = vmatprep.mubr.bf16.mxu1 %v2884_v25 }
 0x33f   : > { %v1722_v13 = vadd.f32 %v2482_v6, %v3413_v19 }
 0x341   : > { %v1752_v2 = vmax.f32 %v1722_v13, 0.0 }
 0x343   : > { %v1762_v26 = vpack.c.bf16 %v1752_v2, %v1751_v21 }
 0x345   : > { %1956 = vmatmul.mubr.bf16.gmra.mxu1 %v1762_v26 }
 0x346   : > { %1965 = vmatprep.mubr.bf16.mxu1 %v2884_v25 }
 0x349   : > { %v2483_v11 = vpop.f32.mrf.mxu0 }
 0x34b   : > { %v2484_v52 = vpop.f32.mrf.mxu0 }
 0x34c   : > { %v2485_v59 = vadd.f32 %v2484_v52, %v2483_v11 }
 0x34d   : > { %v2486_v18 = vpop.f32.mrf.mxu0 }
 0x34e   : > { %v1727_v28 = vadd.f32 %v2485_v59, %v3413_v19 }
 0x34f   : > { %v2487_v27 = vpop.f32.mrf.mxu0 }
 0x350   : > { %v2488_v22 = vadd.f32 %v2487_v27, %v2486_v18  ;;  %v1753_v17 = vmax.f32 %v1727_v28, 0.0 }
 0x352   : > { %v1730_v14 = vadd.f32 %v2488_v22, %v3413_v19 }
 0x354   : > { %v1754_v29 = vmax.f32 %v1730_v14, 0.0  ;;  %v2489_v15 = vpop.f32.mrf.mxu0 }
 0x356   : > { %v2490_v30 = vpop.f32.mrf.mxu0  ;;  %v1763_v55 = vpack.c.bf16 %v1754_v29, %v1753_v17 }
 0x357   : > { %v2491_v60 = vadd.f32 %v2490_v30, %v2489_v15 }
 0x358   : > { %v2492_v36 = vpop.f32.mrf.mxu0  ;;  %1966 = vmatmul.mubr.bf16.gmra.mxu1 %v1763_v55 }
 0x359   : > { %1975 = vmatprep.mubr.bf16.mxu1 %v2884_v25  ;;  %v1735_v8 = vadd.f32 %v2491_v60, %v3413_v19  ;;  %v3447_v25 = vrot.slane %v1781_v0, %v1264_v24 }
 0x35a   : > { %v2493_v33 = vpop.f32.mrf.mxu0 }
 0x35b   : > { %v2494_v56 = vadd.f32 %v2493_v33, %v2492_v36  ;;  %v1755_v61 = vmax.f32 %v1735_v8, 0.0 }
 0x35d   : > { %v1738_v39 = vadd.f32 %v2494_v56, %v3413_v19 }
 0x35f   : > { %v1756_v40 = vmax.f32 %v1738_v39, 0.0 }
 0x361   : > { %v1764_v31 = vpack.c.bf16 %v1756_v40, %v1755_v61 }
 0x363   : > { %1976 = vmatmul.mubr.bf16.gmra.mxu1 %v1764_v31 }
 0x3d0   : > { %v1907_v37 = vpop.f32.mrf.mxu1 }
 0x3d1   : > { %v1908_v19 = vadd.f32 %v1907_v37, %v3443_v42 }
 0x3d2   : > { %v1909_v43 = vpop.f32.mrf.mxu1 }
 0x3d3   : > { %v1910_v44 = vadd.f32 %v1909_v43, %v3447_v25 }
 0x3d4   : > { %v1911_v9 = vpop.f32.mrf.mxu1 }
 0x3d5   : > { %v2349_v38 = vpack.c.bf16 %v1910_v44, %v1908_v19  ;;  %v1912_v1 = vadd.f32 %v1911_v9, %v3443_v42 }
 0x3d6   : > { %v1913_v45 = vpop.f32.mrf.mxu1 }
 0x3d7   : > { %2082 = vst [vmem:[%s3453_s12] sm:$0xff] %v2349_v38  ;;  %v1914_v24 = vadd.f32 %v1913_v45, %v3447_v25 }
 0x3d8   : > { %v1917_v63 = vpop.f32.mrf.mxu1 }
 0x3d9   : > { %v2350_v41 = vpack.c.bf16 %v1914_v24, %v1912_v1  ;;  %v1918_v46 = vadd.f32 %v1917_v63, %v3443_v42 }
 0x3da   : > { %v1919_v48 = vpop.f32.mrf.mxu1 }
 0x3db   : > { %2083 = vst [vmem:[%s3453_s12 + $0x8] sm:$0xff] %v2350_v41  ;;  %v1920_v47 = vadd.f32 %v1919_v48, %v3447_v25 }
 0x3dc   : > { %v1921_v49 = vpop.f32.mrf.mxu1 }
 0x3dd   : > { %v2351_v4 = vpack.c.bf16 %v1920_v47, %v1918_v46  ;;  %v1922_v3 = vadd.f32 %v1921_v49, %v3443_v42 }
 0x3de   : > { %v1923_v50 = vpop.f32.mrf.mxu1 }
 0x3df   : > { %2084 = vst [vmem:[%s3453_s12 + $0x10] sm:$0xff] %v2351_v4  ;;  %v1924_v20 = vadd.f32 %v1923_v50, %v3447_v25 }
 0x3e1   : > { %v2352_v53 = vpack.c.bf16 %v1924_v20, %v1922_v3 }
 0x3e3   : > { %2085 = vst [vmem:[%s3453_s12 + $0x18] sm:$0xff] %v2352_v53 }
 0x3e7   : > { %v1927_v35 = vpop.f32.mrf.mxu1 }
 0x3e8   : > { %v1928_v34 = vadd.f32 %v1927_v35, %v3443_v42 }
 0x3e9   : > { %v1929_v54 = vpop.f32.mrf.mxu1 }
 0x3ea   : > { %v1930_v58 = vadd.f32 %v1929_v54, %v3447_v25 }
 0x3eb   : > { %v1931_v62 = vpop.f32.mrf.mxu1 }
 0x3ec   : > { %v2353_v7 = vpack.c.bf16 %v1930_v58, %v1928_v34  ;;  %v1932_v12 = vadd.f32 %v1931_v62, %v3443_v42 }
 0x3ed   : > { %v1933_v32 = vpop.f32.mrf.mxu1 }
 0x3ee   : > { %2086 = vst [vmem:[%s3453_s12 + $0x20] sm:$0xff] %v2353_v7  ;;  %v1934_v5 = vadd.f32 %v1933_v32, %v3447_v25 }
 0x3ef   : > { %v1937_v10 = vpop.f32.mrf.mxu1 }
 0x3f0   : > { %v2354_v23 = vpack.c.bf16 %v1934_v5, %v1932_v12  ;;  %v1938_v51 = vadd.f32 %v1937_v10, %v3443_v42 }
 0x3f1   : > { %v1939_v57 = vpop.f32.mrf.mxu1 }
 0x3f2   : > { %2087 = vst [vmem:[%s3453_s12 + $0x28] sm:$0xff] %v2354_v23  ;;  %v1940_v16 = vadd.f32 %v1939_v57, %v3447_v25 }
 0x3f3   : > { %v1941_v6 = vpop.f32.mrf.mxu1 }
 0x3f4   : > { %v2355_v13 = vpack.c.bf16 %v1940_v16, %v1938_v51  ;;  %v1942_v2 = vadd.f32 %v1941_v6, %v3443_v42 }
 0x3f5   : > { %v1943_v21 = vpop.f32.mrf.mxu1 }
 0x3f6   : > { %2088 = vst [vmem:[%s3453_s12 + $0x30] sm:$0xff] %v2355_v13  ;;  %v1944_v26 = vadd.f32 %v1943_v21, %v3447_v25 }
 0x3f8   : > { %v2356_v11 = vpack.c.bf16 %v1944_v26, %v1942_v2 }
 0x3fa   : > { %2089 = vst [vmem:[%s3453_s12 + $0x38] sm:$0xff] %v2356_v11 }
 0x3fd   : > { %v1947_v52 = vpop.f32.mrf.mxu1 }
 0x3fe   : > { %v1948_v18 = vadd.f32 %v1947_v52, %v3443_v42 }
 0x3ff   : > { %v1949_v59 = vpop.f32.mrf.mxu1 }
 0x400   : > { %v1950_v27 = vadd.f32 %v1949_v59, %v3447_v25 }
 0x401   : > { %v1951_v28 = vpop.f32.mrf.mxu1 }
 0x402   : > { %v2357_v22 = vpack.c.bf16 %v1950_v27, %v1948_v18  ;;  %v1952_v17 = vadd.f32 %v1951_v28, %v3443_v42 }
 0x403   : > { %v1953_v14 = vpop.f32.mrf.mxu1 }
 0x404   : > { %2090 = vst [vmem:[%s3453_s12 + $0x40] sm:$0xff] %v2357_v22  ;;  %v1954_v29 = vadd.f32 %v1953_v14, %v3447_v25 }
 0x405   : > { %v1957_v30 = vpop.f32.mrf.mxu1 }
 0x406   : > { %v2358_v15 = vpack.c.bf16 %v1954_v29, %v1952_v17  ;;  %v1958_v60 = vadd.f32 %v1957_v30, %v3443_v42 }
 0x407   : > { %v1959_v55 = vpop.f32.mrf.mxu1 }
 0x408   : > { %2091 = vst [vmem:[%s3453_s12 + $0x48] sm:$0xff] %v2358_v15  ;;  %v1960_v36 = vadd.f32 %v1959_v55, %v3447_v25 }
 0x409   : > { %v1961_v33 = vpop.f32.mrf.mxu1 }
 0x40a   : > { %v2359_v8 = vpack.c.bf16 %v1960_v36, %v1958_v60  ;;  %v1962_v39 = vadd.f32 %v1961_v33, %v3443_v42 }
 0x40b   : > { %v1963_v56 = vpop.f32.mrf.mxu1 }
 0x40c   : > { %2092 = vst [vmem:[%s3453_s12 + $0x50] sm:$0xff] %v2359_v8  ;;  %v1964_v61 = vadd.f32 %v1963_v56, %v3447_v25 }
 0x40e   : > { %v2360_v40 = vpack.c.bf16 %v1964_v61, %v1962_v39 }
 0x410   : > { %2093 = vst [vmem:[%s3453_s12 + $0x58] sm:$0xff] %v2360_v40 }
 0x418   : > { %v1967_v31 = vpop.f32.mrf.mxu1 }
 0x419   : > { %v1968_v37 = vadd.f32 %v1967_v31, %v3443_v42 }
 0x41a   : > { %v1969_v0 = vpop.f32.mrf.mxu1 }
 0x41b   : > { %v1970_v43 = vadd.f32 %v1969_v0, %v3447_v25 }
 0x41c   : > { %v1971_v19 = vpop.f32.mrf.mxu1 }
 0x41d   : > { %v2361_v44 = vpack.c.bf16 %v1970_v43, %v1968_v37  ;;  %v1972_v38 = vadd.f32 %v1971_v19, %v3443_v42 }
 0x41e   : > { %v1973_v9 = vpop.f32.mrf.mxu1 }
 0x41f   : > { %2094 = vst [vmem:[%s3453_s12 + $0x60] sm:$0xff] %v2361_v44  ;;  %v1974_v45 = vadd.f32 %v1973_v9, %v3447_v25 }
 0x421   : > { %v2362_v1 = vpack.c.bf16 %v1974_v45, %v1972_v38 }
 0x423   : > { %2095 = vst [vmem:[%s3453_s12 + $0x68] sm:$0xff] %v2362_v1  ;;  %v1977_v24 = vpop.f32.mrf.mxu1 }
 0x424   : > { %v1978_v41 = vadd.f32 %v1977_v24, %v3443_v42 }
 0x425   : > { %v1979_v63 = vpop.f32.mrf.mxu1 }
 0x426   : > { %v1980_v48 = vadd.f32 %v1979_v63, %v3447_v25 }
 0x427   : > { %v1981_v46 = vpop.f32.mrf.mxu1 }
 0x428   : > { %v2363_v47 = vpack.c.bf16 %v1980_v48, %v1978_v41  ;;  %v1982_v4 = vadd.f32 %v1981_v46, %v3443_v42 }
 0x429   : > { %v1983_v49 = vpop.f32.mrf.mxu1 }
 0x42a   : > { %2096 = vst [vmem:[%s3453_s12 + $0x70] sm:$0xff] %v2363_v47  ;;  %v1984_v50 = vadd.f32 %v1983_v49, %v3447_v25 }
 0x42c   : > { %v2364_v3 = vpack.c.bf16 %v1984_v50, %v1982_v4 }
 0x42e   : > { %2097 = vst [vmem:[%s3453_s12 + $0x78] sm:$0xff] %v2364_v3 }
 0x42f   : > { %2814 = shalt.err (!%p2811_p3)
}
 0x430   : > { %s2815_s11 = scalar_lea.hbm %s3505_s28, 2048  ;;  %s2819_s14 = scalar_lea.hbm %s3561_s10, 4096 }
 0x431   : > { %p2816_p5 = scmp.ne.s32.totalorder %s3505_s28, %s2815_s11  ;;  %p2820_p11 = scmp.lt.s32.totalorder %s3505_s28, %s3561_s10 }
 0x432   : > { %p2821_p10 = scmp.lt.s32.totalorder %s2819_s14, %s2815_s11 }
 0x433   : > { %p2817_p8 = pnand %p2816_p5, %p3591_p1 }
 0x434   : > { %p2822_p7 = por %p2821_p10, %p2820_p11 }
 0x435   : > { %p2818_p2 = pneg %p2817_p8 }
 0x437   : > { %p2823_p12 = pnand %p2822_p7, %p2818_p2 }
 0x439   : > { %2826 = shalt.err (!%p2823_p12)
}
 0x43a   : > { %s2886_s22 = smov 128   ;;  %s2887_s20 = smov 8  }
 0x43b   : > { %2513 = dma.vmem_to_hbm [thread:$0]  (%p3591_p1), %s3507_s30, 2048, %s3505_s28, %s2099_s0, %s2886_s22, %s2886_s22, %s2887_s20  }
 0x43c PF: > { %s2128_s19 = sand.u32 1, %s2861_s15   ;;  %p3592_p9 = scmp.ne.s32.totalorder %s3572_s21, 0 }
 0x43d   : > { %p3593_p13 = scmp.ge.s32.totalorder %s2873_s18, 2  ;;  %s2129_s25 = scalar_lea.sflag [#allocation6], %s2128_s19 }
 0x43f   : > { %p2533_p6 = pnand %p3593_p13, %p3592_p9 }
 0x441   : > { %p2534_p4 = pneg %p2533_p6 }
 0x443   : > { %2856 = dma.done.wait (%p2534_p4), %s2129_s25, 2048  }
 0x444   : > { %2858 = vsyncadd (%p2534_p4), %s2129_s25, 4294965248  ;;  %p26_p0 = scmp.ge.s32.totalorder %s3040_s23, 4   ;;  %s3594_s15 = smov %s2865_s16 }
 0x445   : > { %s3595_s16 = smov %s2869_s17  ;;  %s3596_s17 = smov %s3056_s27 }
 0x446   : > { %s3597_s18 = smov %s3040_s23  ;;  %28 = sbr.rel (!%p26_p0) target bundleno = 12 (0xc), region = 117 }
 0x44b   :  { %2134 = vsyncpa [#allocation5], 1 }
 0x44c   :  { %2136 = vsyncpa [#allocation5 + $0x1], 1 }
 0x44d   :  { %2137 = vsyncpa [#allocation8], 1 }
 0x44e   :  { %2138 = vsyncpa [#allocation11], 1 }
 0x44f   :  { %2139 = vsyncpa [#allocation6], 1 }
 0x450   :  { %2141 = vsyncpa [#allocation6 + $0x1], 1 }

</bundles_post_ra>
